<compile_context>
chip_gen: v7x
topology: tpu7x:2x2x1
jax: 0.10.0
libtpu: 0.0.40
codegen_flags: <defaults>
</compile_context>

<pallas_src>
import functools

import jax
import jax.numpy as jnp
from jax.experimental import pallas as pl
from jax.experimental.pallas import tpu as pltpu

DATA_DIM = 2      # config['data_dim']
H1 = 256
H2 = 128
OUT = 1
LANE = 128        # TPU lane width
MAX_TB = 2048     # batch-tile cap (lanes): intermediates stay ~3 MiB in VMEM


def _leaky_relu(x, slope=0.2):
    return jnp.where(x > 0, x, slope * x)


def _round_up(x, m):
    return (x + m - 1) // m * m


def disc_kernel(xt_ref, w1_ref, b1_ref, w2_ref, b2_ref, w3_ref, b3_ref, o_ref):
    """Fused 3-layer MLP, transposed (feature-major) layout.

    xt_ref : (DATA_DIM, tb)  f32   batch on lanes
    w1_ref : (H1, DATA_DIM)  f32   b1_ref : (H1, 1) f32
    w2_ref : (H2, H1)        bf16  b2_ref : (H2, 1) f32
    w3_ref : (H2, OUT)       f32   b3_ref : (1, 1)  f32
    o_ref  : (1, tb)         f32   lane-dense output slab
    """
    xt = xt_ref[...]                                   # (DATA_DIM, tb) f32

    # ---- Layer 1: K=2 -> VPU outer product instead of a degenerate MXU pass.
    h1 = w1_ref[:, 0:1] * xt[0:1, :]                   # (H1,1)*(1,tb) -> (H1,tb)
    for i in range(1, DATA_DIM):
        h1 = h1 + w1_ref[:, i:i + 1] * xt[i:i + 1, :]
    h1 = _leaky_relu(h1 + b1_ref[...])                 # (H1, tb) f32

    # ---- Layer 2: the one real MXU matmul, bf16 operands, f32 accumulation.
    h2 = jnp.dot(w2_ref[...], h1.astype(jnp.bfloat16),
                 preferred_element_type=jnp.float32)   # (H2, tb) f32
    h2 = _leaky_relu(h2 + b2_ref[...])

    # ---- Layer 3: N=1 -> VPU multiply + sublane reduce (stays lane-dense).
    logits = jnp.sum(h2 * w3_ref[...], axis=0, keepdims=True) + b3_ref[...]  # (1, tb)

    # ---- Sigmoid: exp on EUP; exact reciprocal (EUP slack, better near 0/1).
    o_ref[...] = pl.reciprocal(1.0 + jnp.exp(-logits), approx=False)


def _choose_tiling(batch):
    """Return (tb, num_tiles, b_pad). Single step for small batches; even step
    count (v7x megacore balance) with tb <= MAX_TB for large batches."""
    b_lane = _round_up(max(batch, 1), LANE)
    if b_lane <= MAX_TB:
        return b_lane, 1, b_lane
    num_tiles = -(-b_lane // MAX_TB)
    if num_tiles % 2:
        num_tiles += 1                                  # keep step count even
    tb = _round_up(-(-b_lane // num_tiles), LANE)
    return tb, num_tiles, tb * num_tiles


def _vmem_limit_bytes(tb):
    """Explicit VMEM budget: double-buffered x/out blocks + weights + f32
    intermediates (h1, h2, logits), with 2x headroom. Portable across the
    16/32/32 MiB default scoped limits of v5e/v6e/v7x."""
    x_blk = DATA_DIM * tb * 4
    o_blk = OUT * tb * 4
    weights = 4 * (H1 * DATA_DIM + H1 + H2 + H2 * OUT + 1) + 2 * (H2 * H1)
    inter = (H1 + H2 + OUT) * tb * 4
    need = 2 * (x_blk + o_blk + weights) + inter
    return int(min(32 << 20, max(4 << 20, 2 * need)))


@functools.partial(jax.jit, static_argnames=("tb", "num_tiles", "b_pad"))
def _forward_impl(x, w1, b1, w2, b2, w3, b3, *, tb, num_tiles, b_pad):
    B = x.shape[0]

    # Layout plumbing kept inside the same jit; the xt operand is marked
    # allow_input_fusion so XLA can fold the transpose+pad into the call.
    xt = x.T.astype(jnp.float32)                        # (DATA_DIM, B)
    if b_pad != B:
        xt = jnp.pad(xt, ((0, 0), (0, b_pad - B)))

    # Stage params in the kernel's column layout (PyTorch weights are (out, in)).
    w1m = w1.astype(jnp.float32)                        # (H1, DATA_DIM)
    b1m = b1.reshape(H1, 1).astype(jnp.float32)
    w2m = w2.astype(jnp.bfloat16)                       # (H2, H1) bf16 MXU operand
    b2m = b2.reshape(H2, 1).astype(jnp.float32)
    w3m = w3.reshape(OUT, H2).T.astype(jnp.float32)     # (H2, OUT)
    b3m = b3.reshape(1, 1).astype(jnp.float32)

    rep = lambda i: (0, 0)
    in_specs = [
        pl.BlockSpec((DATA_DIM, tb), lambda i: (0, i)),   # x tile (lane-dense)
        pl.BlockSpec((H1, DATA_DIM), rep),
        pl.BlockSpec((H1, 1), rep),
        pl.BlockSpec((H2, H1), rep),
        pl.BlockSpec((H2, 1), rep),
        pl.BlockSpec((H2, OUT), rep),
        pl.BlockSpec((1, 1), rep),
    ]
    out_spec = pl.BlockSpec((1, tb), lambda i: (0, i))    # lane-dense output slab

    flops = 2 * b_pad * (DATA_DIM * H1 + H1 * H2 + H2 * OUT)
    weight_bytes = 4 * (H1 * DATA_DIM + H1 + H2 + H2 * OUT + 1) + 2 * (H2 * H1)
    bytes_accessed = 4 * (DATA_DIM * b_pad + b_pad) + weight_bytes

    out = pl.pallas_call(
        disc_kernel,
        out_shape=jax.ShapeDtypeStruct((1, b_pad), jnp.float32),
        grid=(num_tiles,),
        in_specs=in_specs,
        out_specs=out_spec,
        compiler_params=pltpu.CompilerParams(
            dimension_semantics=("parallel",),
            vmem_limit_bytes=_vmem_limit_bytes(tb),
            allow_input_fusion=[True, False, False, False, False, False, False],
        ),
        cost_estimate=pl.CostEstimate(
            flops=flops,
            transcendentals=b_pad,
            bytes_accessed=bytes_accessed,
        ),
    )(xt, w1m, b1m, w2m, b2m, w3m, b3m)

    return out[0, :B].reshape(B, OUT)


def discriminator_forward(x, params):
    """x: (B, DATA_DIM) float32.  Returns (B, 1) float32 sigmoid probabilities."""
    w1, b1, w2, b2, w3, b3 = params                     # PyTorch layout (out, in)
    tb, num_tiles, b_pad = _choose_tiling(x.shape[0])
    return _forward_impl(x, w1, b1, w2, b2, w3, b3,
                         tb=tb, num_tiles=num_tiles, b_pad=b_pad)


def init_params(key):
    """PyTorch Linear default init: U(-1/sqrt(fan_in), 1/sqrt(fan_in)), weight (out, in)."""
    ks = jax.random.split(key, 6)

    def lin(kw, kb, fan_in, fan_out):
        bound = 1.0 / (fan_in ** 0.5)
        w = jax.random.uniform(kw, (fan_out, fan_in), jnp.float32, -bound, bound)
        b = jax.random.uniform(kb, (fan_out,), jnp.float32, -bound, bound)
        return w, b

    w1, b1 = lin(ks[0], ks[1], DATA_DIM, H1)
    w2, b2 = lin(ks[2], ks[3], H1, H2)
    w3, b3 = lin(ks[4], ks[5], H2, OUT)
    return (w1, b1, w2, b2, w3, b3)


def reference_forward(x, params):
    w1, b1, w2, b2, w3, b3 = params
    h = _leaky_relu(x @ w1.T + b1)
    h = _leaky_relu(h @ w2.T + b2)
    return jax.nn.sigmoid(h @ w3.T + b3)


if __name__ == "__main__":
    key = jax.random.PRNGKey(0)
    kp, kx = jax.random.split(key)

    params = init_params(kp)

    B = 200  # small demo batch (non-multiple of 128 exercises pad + slice-back)
    x = jax.random.normal(kx, (B, DATA_DIM), jnp.float32)

    y = discriminator_forward(x, params)
    y = jax.block_until_ready(y)

    y_ref = reference_forward(x, params)
    assert y.shape == (B, OUT)
    # atol accounts for the bf16 layer-2 MXU operands (f32 accumulation).
    assert jnp.allclose(y, y_ref, atol=5e-3, rtol=0), "mismatch vs JAX reference"

    print("KERNEL_OK")
</pallas_src>

<mosaic_0001>
module attributes {stable_mosaic.version = 11 : i64} {
  func.func @disc_kernel(%arg0: i32, %arg1: memref<2x256xf32, #tpu.memory_space<vmem>>, %arg2: memref<256x2xf32, #tpu.memory_space<vmem>>, %arg3: memref<256x1xf32, #tpu.memory_space<vmem>>, %arg4: memref<128x256xbf16, #tpu.memory_space<vmem>>, %arg5: memref<128x1xf32, #tpu.memory_space<vmem>>, %arg6: memref<128x1xf32, #tpu.memory_space<vmem>>, %arg7: memref<1x1xf32, #tpu.memory_space<vmem>>, %arg8: memref<1x256xf32, #tpu.memory_space<vmem>>) attributes {dimension_semantics = [#tpu.dimension_semantics<parallel>], iteration_bounds = array<i64: 1>, scalar_prefetch = 0 : i64, scratch_operands = 0 : i64, tpu.core_type = #tpu.core_type<tc>, window_params = [{transform_indices = @transform_0, window_bounds = array<i64: 2, 256>}, {pipeline_mode = #tpu.pipeline_mode<synchronous>, transform_indices = @transform_1, window_bounds = array<i64: 256, 2>}, {pipeline_mode = #tpu.pipeline_mode<synchronous>, transform_indices = @transform_2, window_bounds = array<i64: 256, 1>}, {pipeline_mode = #tpu.pipeline_mode<synchronous>, transform_indices = @transform_3, window_bounds = array<i64: 128, 256>}, {pipeline_mode = #tpu.pipeline_mode<synchronous>, transform_indices = @transform_4, window_bounds = array<i64: 128, 1>}, {pipeline_mode = #tpu.pipeline_mode<synchronous>, transform_indices = @transform_5, window_bounds = array<i64: 128, 1>}, {pipeline_mode = #tpu.pipeline_mode<synchronous>, transform_indices = @transform_6, window_bounds = array<i64: 1, 1>}, {transform_indices = @transform_7, window_bounds = array<i64: 1, 256>}]} {
    %c0 = arith.constant 0 : index
    %c0_0 = arith.constant 0 : index
    %0 = vector.load %arg1[%c0, %c0_0] : memref<2x256xf32, #tpu.memory_space<vmem>>, vector<2x256xf32>
    %c0_1 = arith.constant 0 : index
    %c0_2 = arith.constant 0 : index
    %1 = vector.load %arg2[%c0_1, %c0_2] : memref<256x2xf32, #tpu.memory_space<vmem>>, vector<256x1xf32>
    %2 = vector.extract_strided_slice %0 {offsets = [0, 0], sizes = [1, 256], strides = [1, 1]} : vector<2x256xf32> to vector<1x256xf32>
    %3 = vector.broadcast %1 : vector<256x1xf32> to vector<256x256xf32>
    %4 = vector.broadcast %2 : vector<1x256xf32> to vector<256x256xf32>
    %5 = arith.mulf %3, %4 : vector<256x256xf32>
    %c0_3 = arith.constant 0 : index
    %c1 = arith.constant 1 : index
    %6 = vector.load %arg2[%c0_3, %c1] : memref<256x2xf32, #tpu.memory_space<vmem>>, vector<256x1xf32>
    %7 = vector.extract_strided_slice %0 {offsets = [1, 0], sizes = [1, 256], strides = [1, 1]} : vector<2x256xf32> to vector<1x256xf32>
    %8 = vector.broadcast %6 : vector<256x1xf32> to vector<256x256xf32>
    %9 = vector.broadcast %7 : vector<1x256xf32> to vector<256x256xf32>
    %10 = arith.mulf %8, %9 : vector<256x256xf32>
    %11 = arith.addf %5, %10 : vector<256x256xf32>
    %c0_4 = arith.constant 0 : index
    %c0_5 = arith.constant 0 : index
    %12 = vector.load %arg3[%c0_4, %c0_5] : memref<256x1xf32, #tpu.memory_space<vmem>>, vector<256x1xf32>
    %13 = vector.broadcast %12 : vector<256x1xf32> to vector<256x256xf32>
    %14 = arith.addf %11, %13 : vector<256x256xf32>
    %cst = arith.constant 0.000000e+00 : f32
    %15 = vector.broadcast %cst : f32 to vector<256x256xf32>
    %16 = arith.cmpf ogt, %14, %15 : vector<256x256xf32>
    %cst_6 = arith.constant 2.000000e-01 : f32
    %17 = vector.broadcast %cst_6 : f32 to vector<256x256xf32>
    %18 = arith.mulf %17, %14 : vector<256x256xf32>
    %19 = arith.select %16, %14, %18 : vector<256x256xi1>, vector<256x256xf32>
    %c0_7 = arith.constant 0 : index
    %c0_8 = arith.constant 0 : index
    %20 = vector.load %arg4[%c0_7, %c0_8] : memref<128x256xbf16, #tpu.memory_space<vmem>>, vector<128x256xbf16>
    %21 = arith.truncf %19 : vector<256x256xf32> to vector<256x256xbf16>
    %cst_9 = arith.constant dense<0.000000e+00> : vector<128x256xf32>
    %22 = tpu.matmul %20, %21, %cst_9 {dimension_numbers = #tpu.dot_dimension_numbers<[1], [0], [0], [1], [0, 0, 1, 1], [], []>} : vector<128x256xbf16>, vector<256x256xbf16>, vector<128x256xf32> -> vector<128x256xf32>
    %c0_10 = arith.constant 0 : index
    %c0_11 = arith.constant 0 : index
    %23 = vector.load %arg5[%c0_10, %c0_11] : memref<128x1xf32, #tpu.memory_space<vmem>>, vector<128x1xf32>
    %24 = vector.broadcast %23 : vector<128x1xf32> to vector<128x256xf32>
    %25 = arith.addf %22, %24 : vector<128x256xf32>
    %cst_12 = arith.constant 0.000000e+00 : f32
    %26 = vector.broadcast %cst_12 : f32 to vector<128x256xf32>
    %27 = arith.cmpf ogt, %25, %26 : vector<128x256xf32>
    %cst_13 = arith.constant 2.000000e-01 : f32
    %28 = vector.broadcast %cst_13 : f32 to vector<128x256xf32>
    %29 = arith.mulf %28, %25 : vector<128x256xf32>
    %30 = arith.select %27, %25, %29 : vector<128x256xi1>, vector<128x256xf32>
    %c0_14 = arith.constant 0 : index
    %c0_15 = arith.constant 0 : index
    %31 = vector.load %arg6[%c0_14, %c0_15] : memref<128x1xf32, #tpu.memory_space<vmem>>, vector<128x1xf32>
    %32 = vector.broadcast %31 : vector<128x1xf32> to vector<128x256xf32>
    %33 = arith.mulf %30, %32 : vector<128x256xf32>
    %cst_16 = arith.constant dense<0.000000e+00> : vector<256xf32>
    %34 = vector.multi_reduction <add>, %33, %cst_16 [0] : vector<128x256xf32> to vector<256xf32>
    %35 = vector.shape_cast %34 : vector<256xf32> to vector<1x256xf32>
    %c0_17 = arith.constant 0 : index
    %c0_18 = arith.constant 0 : index
    %36 = vector.load %arg7[%c0_17, %c0_18] : memref<1x1xf32, #tpu.memory_space<vmem>>, vector<1x1xf32>
    %37 = vector.broadcast %36 : vector<1x1xf32> to vector<1x256xf32>
    %38 = arith.addf %35, %37 : vector<1x256xf32>
    %cst_19 = arith.constant 0.000000e+00 : f32
    %39 = vector.broadcast %cst_19 : f32 to vector<1x256xf32>
    %40 = arith.subf %39, %38 : vector<1x256xf32>
    %41 = math.exp %40 : vector<1x256xf32>
    %cst_20 = arith.constant 1.000000e+00 : f32
    %42 = vector.broadcast %cst_20 : f32 to vector<1x256xf32>
    %43 = arith.addf %42, %41 : vector<1x256xf32>
    %44 = tpu.reciprocal %43 : vector<1x256xf32> -> vector<1x256xf32>
    %c0_21 = arith.constant 0 : index
    %c0_22 = arith.constant 0 : index
    %45 = vector.load %arg8[%c0_21, %c0_22] : memref<1x256xf32, #tpu.memory_space<vmem>>, vector<1x256xf32>
    tpu.vector_store %arg8[%c0_21, %c0_22], %44 {strides = array<i32>} : memref<1x256xf32, #tpu.memory_space<vmem>>, vector<1x256xf32>,
    return
  }
  func.func @transform_0(%arg0: i32) -> (i32, i32) {
    %c0_i32 = arith.constant 0 : i32
    %c0_i32_0 = arith.constant 0 : i32
    return %c0_i32, %arg0 : i32, i32
  }
  func.func @transform_1(%arg0: i32) -> (i32, i32) {
    %c0_i32 = arith.constant 0 : i32
    %c0_i32_0 = arith.constant 0 : i32
    %c0_i32_1 = arith.constant 0 : i32
    return %c0_i32, %c0_i32_0 : i32, i32
  }
  func.func @transform_2(%arg0: i32) -> (i32, i32) {
    %c0_i32 = arith.constant 0 : i32
    %c0_i32_0 = arith.constant 0 : i32
    %c0_i32_1 = arith.constant 0 : i32
    return %c0_i32, %c0_i32_0 : i32, i32
  }
  func.func @transform_3(%arg0: i32) -> (i32, i32) {
    %c0_i32 = arith.constant 0 : i32
    %c0_i32_0 = arith.constant 0 : i32
    %c0_i32_1 = arith.constant 0 : i32
    return %c0_i32, %c0_i32_0 : i32, i32
  }
  func.func @transform_4(%arg0: i32) -> (i32, i32) {
    %c0_i32 = arith.constant 0 : i32
    %c0_i32_0 = arith.constant 0 : i32
    %c0_i32_1 = arith.constant 0 : i32
    return %c0_i32, %c0_i32_0 : i32, i32
  }
  func.func @transform_5(%arg0: i32) -> (i32, i32) {
    %c0_i32 = arith.constant 0 : i32
    %c0_i32_0 = arith.constant 0 : i32
    %c0_i32_1 = arith.constant 0 : i32
    return %c0_i32, %c0_i32_0 : i32, i32
  }
  func.func @transform_6(%arg0: i32) -> (i32, i32) {
    %c0_i32 = arith.constant 0 : i32
    %c0_i32_0 = arith.constant 0 : i32
    %c0_i32_1 = arith.constant 0 : i32
    return %c0_i32, %c0_i32_0 : i32, i32
  }
  func.func @transform_7(%arg0: i32) -> (i32, i32) {
    %c0_i32 = arith.constant 0 : i32
    %c0_i32_0 = arith.constant 0 : i32
    return %c0_i32, %arg0 : i32, i32
  }
}

</mosaic_0001>

<bundles_post_ra>
// kernel: _forward_impl.2
= control target key start
LH: loop header
LB: loop body
LE: loop exit
PB: predicated region body
PF: predicated region fallthrough
CT: control target
= control target key end

     0   :  { %s2841_s0 = inlined_call_operand.vmem [shape: f32[256,2], index: 0, kind: input, shape index: {}]   ;;  %s2842_s1 = inlined_call_operand.vmem [shape: f32[256,1], index: 1, kind: input, shape index: {}]   ;;  %s2843_s2 = inlined_call_operand.vmem [shape: bf16[128,256], index: 2, kind: input, shape index: {}]   ;;  %s2844_s3 = inlined_call_operand.vmem [shape: f32[128,1], index: 3, kind: input, shape index: {}]   ;;  %s2845_s4 = inlined_call_operand.vmem [shape: f32[128,1], index: 4, kind: input, shape index: {}]   ;;  %s2846_s5 = inlined_call_operand.<no memory space> [shape: f32[1,1], index: 5, kind: input, shape index: {}]   ;;  %s2847_s6 = inlined_call_operand.vmem [shape: f32[2,200], index: 6, kind: input, shape index: {}]   ;;  %s2848_s7 = inlined_call_operand.<no memory space> [shape: f32[], index: 7, kind: input, shape index: {}]   ;;  %s2849_s8 = inlined_call_operand.vmem [shape: f32[1,256], index: 8, kind: output, shape index: {}]  }
   0x1   :  { %v13_v0 = vstv %s2848_s7  ;;  %v14_v1 = vstv %s2846_s5 }
   0x2   :  { %15 = vst [vmem:[#allocation7] sm:$0x1] %v14_v1 }
   0x3   :  { %v61_v2 = vld [vmem:[%s2841_s0 + $0x10] sm:$0xff]  ;;  %v1885_v3 = vld [vmem:[%s2841_s0] sm:$0xff]  ;;  %v2854_v4 = vmov 1   ;;  %v2851_v5 = vmov 0   ;;  %v2850_v6 = vlaneseq  ;;  %v62_v7 = vld [vmem:[%s2841_s0 + $0x18] sm:$0xff] }
   0x4   :  { %1761 = vset.pattern.permute.xlu0 %v2854_v4  ;;  %1760 = vset.pattern.permute.xlu1 %v2851_v5  ;;  %v64_v9 = vld [vmem:[%s2841_s0 + $0x28] sm:$0xff]  ;;  %v1900_v10 = vld [vmem:[%s2841_s0 + $0x30] sm:$0xff]  ;;  %v66_v13 = vld [vmem:[%s2841_s0 + $0x38] sm:$0xff] }
   0x5   :  { %103 = vperm.xlu1 %1760, %v61_v2   ;;  %335 = vperm.xlu0 %1761, %v1885_v3   ;;  %v51_v8 = vand.u32 127, %v2850_v6  ;;  %v1903_v11 = vshrl.u32 %v2850_v6, 7  ;;  %v1912_v14 = vld [vmem:[%s2841_s0 + $0x50] sm:$0xff]  ;;  %v30_v15 = vld [vmem:[%s2847_s6] sm:$0x3]  ;;  %v68_v17 = vld [vmem:[%s2841_s0 + $0x48] sm:$0xff] }
   0x6   :  { %v1708_v16 = vld [vmem:[%s2847_s6 + $0x2] sm:$0x3]  ;;  %v1928_v18 = vld [vmem:[%s2841_s0 + $0x70] sm:$0xff]  ;;  %v70_v22 = vld [vmem:[%s2841_s0 + $0x58] sm:$0xff] }
   0x7   :  { %2862 = vst [vmem:[#allocation9_spill] sm:$0xff] %v1903_v11  ;;  %v52_v12 = vadd.s32 128, %v51_v8  ;;  %vm34_vm0 = vcmp.lt.s32.totalorder %v1903_v11, 2  ;;  %v1937_v23 = vld [vmem:[%s2841_s0 + $0x80] sm:$0xff]  ;;  %v1943_v24 = vld [vmem:[%s2841_s0 + $0x68] sm:$0xff]  ;;  %v1948_v25 = vld [vmem:[%s2841_s0 + $0x90] sm:$0xff] }
   0x8   :  { %v35_v19 = vsel %vm34_vm0, %v30_v15, %v13_v0  ;;  %v49_v20 = vsel %vm34_vm0, %v1708_v16, %v13_v0  ;;  %v1955_v26 = vld [vmem:[%s2841_s0 + $0x78] sm:$0xff]  ;;  %v1960_v27 = vld [vmem:[%s2841_s0 + $0xa0] sm:$0xff]  ;;  %v1967_v28 = vld [vmem:[%s2841_s0 + $0xb0] sm:$0xff] }
   0x9   :  { %108 = vperm.xlu1 %1760, %v62_v7   ;;  %347 = vperm.xlu0 %1761, %v62_v7   ;;  %vm53_vm1 = vcmp.lt.s32.totalorder %v52_v12, 200  ;;  %42 = vst [vmem:[#allocation8] sm:$0x3] %v35_v19  ;;  %v60_v29 = vld [vmem:[%s2841_s0 + $0x8] sm:$0xff]  ;;  %v1977_v30 = vld [vmem:[%s2841_s0 + $0xc0] sm:$0xff]  ;;  %v1983_v31 = vld [vmem:[%s2841_s0 + $0xd0] sm:$0xff] }
   0xa   :  { %v54_v21 = vsel %vm53_vm1, %v49_v20, %v13_v0  ;;  %v608_v32 = vld [vmem:[%s2842_s1] sm:$0xff]  ;;  %v2002_v35 = vld [vmem:[%s2841_s0 + $0xf0] sm:$0xff]  ;;  %v611_v36 = vld [vmem:[%s2842_s1 + $0x18] sm:$0xff] }
   0xb   :  { %57 = vst [vmem:[#allocation8 + $0x2] sm:$0x3] %v54_v21  ;;  %v1993_v33 = vld [vmem:[%s2841_s0 + $0xe0] sm:$0xff]  ;;  %v615_v40 = vld [vmem:[%s2842_s1 + $0x38] sm:$0xff]  ;;  %v609_v41 = vld [vmem:[%s2842_s1 + $0x8] sm:$0xff] }
   0xc   :  { %v63_v34 = vld [vmem:[%s2841_s0 + $0x20] sm:$0xff]  ;;  %v610_v42 = vld [vmem:[%s2842_s1 + $0x10] sm:$0xff]  ;;  %v613_v44 = vld [vmem:[%s2842_s1 + $0x28] sm:$0xff] }
   0xd   :  { %118 = vperm.xlu1 %1760, %v64_v9   ;;  %359 = vperm.xlu0 %1761, %v1900_v10   ;;  %v612_v37 = vld [vmem:[%s2842_s1 + $0x20] sm:$0xff]  ;;  %v614_v45 = vld [vmem:[%s2842_s1 + $0x30] sm:$0xff]  ;;  %v617_v46 = vld [vmem:[%s2842_s1 + $0x48] sm:$0xff] }
   0xe   :  { %v67_v38 = vld [vmem:[%s2841_s0 + $0x40] sm:$0xff]  ;;  %v619_v47 = vld [vmem:[%s2842_s1 + $0x58] sm:$0xff]  ;;  %v618_v48 = vld [vmem:[%s2842_s1 + $0x50] sm:$0xff] }
   0xf   :  { %v71_v39 = vld [vmem:[%s2841_s0 + $0x60] sm:$0xff]  ;;  %v621_v49 = vld [vmem:[%s2842_s1 + $0x68] sm:$0xff]  ;;  %v623_v50 = vld [vmem:[%s2842_s1 + $0x78] sm:$0xff] }
  0x10   :  { %v616_v43 = vld [vmem:[%s2842_s1 + $0x40] sm:$0xff]  ;;  %v625_v52 = vld [vmem:[%s2842_s1 + $0x88] sm:$0xff]  ;;  %v627_v53 = vld [vmem:[%s2842_s1 + $0x98] sm:$0xff] }
  0x11   :  { %128 = vperm.xlu1 %1760, %v66_v13   ;;  %375 = vperm.xlu0 %1761, %v1912_v14   ;;  %v620_v51 = vld [vmem:[%s2842_s1 + $0x60] sm:$0xff]  ;;  %v76_v54 = vld [vmem:[%s2841_s0 + $0x88] sm:$0xff]  ;;  %v631_v56 = vld [vmem:[%s2842_s1 + $0xb8] sm:$0xff] }
  0x12   :  { %v629_v55 = vld [vmem:[%s2842_s1 + $0xa8] sm:$0xff]  ;;  %v622_v59 = vld [vmem:[%s2842_s1 + $0x70] sm:$0xff]  ;;  %v635_v63 = vld [vmem:[%s2842_s1 + $0xd8] sm:$0xff] }
  0x13   :  { %v633_v60 = vld [vmem:[%s2842_s1 + $0xc8] sm:$0xff]  ;;  %v624_v16 = vld [vmem:[%s2842_s1 + $0x80] sm:$0xff] }
  0x14   :  { %v1108_v20 = vld [vmem:[%s2844_s3 + $0x20] sm:$0xff] }
  0x15   :  { %138 = vperm.xlu1 %1760, %v68_v17   ;;  %391 = vperm.xlu0 %1761, %v1928_v18  }
  0x19   :  { %148 = vperm.xlu1 %1760, %v70_v22   ;;  %399 = vperm.xlu0 %1761, %v1937_v23  }
  0x1d   :  { %158 = vperm.xlu1 %1760, %v1943_v24   ;;  %407 = vperm.xlu0 %1761, %v1948_v25  }
  0x21   :  { %168 = vperm.xlu1 %1760, %v1955_v26   ;;  %415 = vperm.xlu0 %1761, %v1960_v27  }
  0x25   :  { %1762 = vset.pattern.permute.xlu1 %v2854_v4  ;;  %423 = vperm.xlu0 %1761, %v1967_v28  }
  0x26   :  { %339 = vperm.xlu1 %1762, %v60_v29  }
  0x29   :  { %431 = vperm.xlu0 %1761, %v1977_v30  }
  0x2a   :  { %343 = vperm.xlu1 %1762, %v61_v2   ;;  %v78_v2 = vld [vmem:[%s2841_s0 + $0x98] sm:$0xff] }
  0x2d   :  { %439 = vperm.xlu0 %1761, %v1983_v31  }
  0x2e   :  { %1763 = vset.pattern.permute.xlu1 %v2851_v5 }
  0x2f   :  { %642 = vperm.xlu1 %1763, %v608_v32  }
  0x31   :  { %447 = vperm.xlu0 %1761, %v1993_v33  }
  0x33   :  { %1764 = vset.pattern.permute.xlu1 %v2854_v4 }
  0x34   :  { %351 = vperm.xlu1 %1764, %v63_v34  }
  0x35   :  { %455 = vperm.xlu0 %1761, %v2002_v35  }
  0x38   :  { %355 = vperm.xlu1 %1764, %v64_v9   ;;  %v1104_v9 = vld [vmem:[%s2844_s3] sm:$0xff] }
  0x39   :  { %1790 = vset.pattern.permute.xlu0 %v2851_v5 }
  0x3a   :  { %93 = vperm.xlu0 %1790, %v1885_v3   ;;  %v637_v3 = vld [vmem:[%s2842_s1 + $0xe8] sm:$0xff] }
  0x3c   :  { %1765 = vset.pattern.permute.xlu1 %v2851_v5 }
  0x3d   :  { %657 = vperm.xlu1 %1765, %v611_v36   ;;  %v1111_v36 = vld [vmem:[%s2844_s3 + $0x38] sm:$0xff] }
  0x3e   :  { %98 = vperm.xlu0 %1790, %v60_v29  }
  0x41   :  { %1766 = vset.pattern.permute.xlu1 %v2854_v4 }
  0x42   :  { %363 = vperm.xlu1 %1766, %v66_v13   ;;  %113 = vperm.xlu0 %1790, %v63_v34   ;;  %v1106_v13 = vld [vmem:[%s2844_s3 + $0x10] sm:$0xff] }
  0x43   :  { %v626_v34 = vld [vmem:[%s2842_s1 + $0x90] sm:$0xff] }
  0x46   :  { %1767 = vset.pattern.permute.xlu1 %v2851_v5  ;;  %123 = vperm.xlu0 %1790, %v1900_v10  }
  0x47   :  { %662 = vperm.xlu1 %1767, %v612_v37  }
  0x4a   :  { %133 = vperm.xlu0 %1790, %v67_v38  }
  0x4b   :  { %1768 = vset.pattern.permute.xlu1 %v2854_v4 }
  0x4c   :  { %367 = vperm.xlu1 %1768, %v67_v38  }
  0x4e   :  { %143 = vperm.xlu0 %1790, %v1912_v14  }
  0x50   :  { %371 = vperm.xlu1 %1768, %v68_v17   ;;  %v1489_v17 = vld [vmem:[%s2845_s4] sm:$0xff] }
  0x52   :  { %153 = vperm.xlu0 %1790, %v71_v39  }
  0x54   :  { %1769 = vset.pattern.permute.xlu1 %v2851_v5 }
  0x55   :  { %677 = vperm.xlu1 %1769, %v615_v40  }
  0x56   :  { %163 = vperm.xlu0 %1790, %v1928_v18  }
  0x59   :  { %1770 = vset.pattern.permute.xlu1 %v2854_v4 }
  0x5a   :  { %379 = vperm.xlu1 %1770, %v70_v22   ;;  %647 = vperm.xlu0 %1790, %v609_v41   ;;  %v82_v41 = vld [vmem:[%s2841_s0 + $0xb8] sm:$0xff] }
  0x5e   :  { %1771 = vset.pattern.permute.xlu1 %v2851_v5  ;;  %652 = vperm.xlu0 %1790, %v610_v42  }
  0x5f   :  { %682 = vperm.xlu1 %1771, %v616_v43   ;;  %v1113_v43 = vld [vmem:[%s2844_s3 + $0x48] sm:$0xff] }
  0x62   :  { %667 = vperm.xlu0 %1790, %v613_v44  }
  0x63   :  { %1772 = vset.pattern.permute.xlu1 %v2854_v4 }
  0x64   :  { %383 = vperm.xlu1 %1772, %v71_v39   ;;  %v1112_v39 = vld [vmem:[%s2844_s3 + $0x40] sm:$0xff] }
  0x66   :  { %672 = vperm.xlu0 %1790, %v614_v45   ;;  %v464_v45 = vsub.s32 1, %v1903_v11 }
  0x68   :  { %387 = vperm.xlu1 %1772, %v1943_v24   ;;  %v1109_v24 = vld [vmem:[%s2844_s3 + $0x28] sm:$0xff] }
  0x6a   :  { %687 = vperm.xlu0 %1790, %v617_v46   ;;  %v468_v46 = vsub.s32 3, %v1903_v11 }
  0x6c   :  { %1773 = vset.pattern.permute.xlu1 %v2851_v5 }
  0x6d   :  { %697 = vperm.xlu1 %1773, %v619_v47   ;;  %v258_v47 = vsub.s32 2, %v1903_v11 }
  0x6e   :  { %692 = vperm.xlu0 %1790, %v618_v48  }
  0x71   :  { %1774 = vset.pattern.permute.xlu1 %v2854_v4 }
  0x72   :  { %395 = vperm.xlu1 %1774, %v1955_v26   ;;  %707 = vperm.xlu0 %1790, %v621_v49   ;;  %v1114_v49 = vld [vmem:[%s2844_s3 + $0x50] sm:$0xff] }
  0x76   :  { %1775 = vset.pattern.permute.xlu1 %v2851_v5  ;;  %717 = vperm.xlu0 %1790, %v623_v50   ;;  %v58_v50 = vld [vmem:[#allocation8] sm:$0xf] }
  0x77   :  { %702 = vperm.xlu1 %1775, %v620_v51   ;;  %v465_v51 = vrot.slane %v58_v50, %v464_v45 }
  0x7a   :  { %727 = vperm.xlu0 %1790, %v625_v52   ;;  %v469_v52 = vrot.slane %v58_v50, %v468_v46 }
  0x7b   :  { %173 = vperm.xlu1 %1775, %v1937_v23   ;;  %v80_v23 = vld [vmem:[%s2841_s0 + $0xa8] sm:$0xff] }
  0x7e   :  { %737 = vperm.xlu0 %1790, %v627_v53  }
  0x7f   :  { %178 = vperm.xlu1 %1775, %v76_v54  }
  0x82   :  { %747 = vperm.xlu0 %1790, %v629_v55   ;;  %v259_v55 = vrot.slane %v58_v50, %v258_v47 }
  0x83   :  { %1776 = vset.pattern.permute.xlu1 %v2854_v4 }
  0x84   :  { %v2089_v57 = vpop.permute.xlu1 %103  ;;  %403 = vperm.xlu1 %1776, %v76_v54   ;;  %v2091_v58 = vpop.permute.xlu0 %335 }
  0x86   :  { %757 = vperm.xlu0 %1790, %v631_v56  }
  0x88   :  { %v2099_v61 = vpop.permute.xlu1 %108  ;;  %1777 = vset.pattern.permute.xlu1 %v2851_v5  ;;  %v2102_v62 = vpop.permute.xlu0 %347 }
  0x89   :  { %712 = vperm.xlu1 %1777, %v622_v59   ;;  %v1115_v59 = vld [vmem:[%s2844_s3 + $0x58] sm:$0xff] }
  0x8a   :  { %767 = vperm.xlu0 %1790, %v633_v60   ;;  %v628_v60 = vld [vmem:[%s2842_s1 + $0xa0] sm:$0xff] }
  0x8c   :  { %v2107_v0 = vpop.permute.xlu1 %118  ;;  %v2109_v1 = vpop.permute.xlu0 %359 }
  0x8d   :  { %183 = vperm.xlu1 %1777, %v1948_v25  }
  0x8e   :  { %777 = vperm.xlu0 %1790, %v635_v63   ;;  %v2220_v63 = vrot.slane %v465_v51, %v464_v45 }
  0x90   :  { %v2118_v7 = vpop.permute.xlu1 %128  ;;  %v2120_v8 = vpop.permute.xlu0 %375 }
  0x91   :  { %188 = vperm.xlu1 %1777, %v78_v2  }
  0x92   :  { %787 = vperm.xlu0 %1790, %v637_v3  }
  0x94   :  { %v2125_v10 = vpop.permute.xlu1 %138  ;;  %v2127_v12 = vpop.permute.xlu0 %391 }
  0x95   :  { %1778 = vset.pattern.permute.xlu1 %v2854_v4 }
  0x96   :  { %411 = vperm.xlu1 %1778, %v78_v2   ;;  %1122 = vperm.xlu0 %1790, %v1104_v9   ;;  %v2222_v2 = vrot.slane %v469_v52, %v464_v45 }
  0x98   :  { %v2133_v14 = vpop.permute.xlu1 %148  ;;  %v2135_v15 = vpop.permute.xlu0 %399  ;;  %v2278_v51 = vmul.f32 %v2222_v2, %v2109_v1 }
  0x9a   :  { %1779 = vset.pattern.permute.xlu1 %v2851_v5  ;;  %1132 = vperm.xlu0 %1790, %v1106_v13  }
  0x9b   :  { %722 = vperm.xlu1 %1779, %v624_v16   ;;  %v1116_v16 = vld [vmem:[%s2844_s3 + $0x60] sm:$0xff] }
  0x9c   :  { %v2144_v18 = vpop.permute.xlu1 %158  ;;  %v2146_v19 = vpop.permute.xlu0 %407 }
  0x9e   :  { %1507 = vperm.xlu0 %1790, %v1489_v17  }
  0x9f   :  { %193 = vperm.xlu1 %1779, %v1960_v27   ;;  %v1110_v27 = vld [vmem:[%s2844_s3 + $0x30] sm:$0xff] }
  0xa0   :  { %v2152_v21 = vpop.permute.xlu1 %168  ;;  %v2154_v22 = vpop.permute.xlu0 %415 }
  0xa2   :  { %1142 = vperm.xlu0 %1790, %v1108_v20  }
  0xa3   :  { %198 = vperm.xlu1 %1779, %v80_v23  }
  0xa4   :  { %v2162_v25 = vpop.permute.xlu0 %423 }
  0xa5   :  { %2863 = vst [vmem:[#allocation10_spill] sm:$0xff] %v2162_v25  ;;  %v2164_v26 = vpop.permute.xlu1 %339 }
  0xa6   :  { %1147 = vperm.xlu0 %1790, %v1109_v24   ;;  %v487_v24 = vmul.f32 %v2222_v2, %v2102_v62 }
  0xa7   :  { %1780 = vset.pattern.permute.xlu1 %v2854_v4 }
  0xa8   :  { %419 = vperm.xlu1 %1780, %v80_v23   ;;  %v2170_v29 = vpop.permute.xlu0 %431  ;;  %v486_v23 = vmul.f32 %v2220_v63, %v2102_v62  ;;  %v1117_v62 = vld [vmem:[%s2844_s3 + $0x68] sm:$0xff] }
  0xa9   :  { %2864 = vst [vmem:[#allocation11_spill] sm:$0xff] %v2170_v29  ;;  %v2172_v32 = vpop.permute.xlu1 %343 }
  0xaa   :  { %1152 = vperm.xlu0 %1790, %v1110_v27  }
  0xac   :  { %1781 = vset.pattern.permute.xlu1 %v2851_v5  ;;  %v2181_v37 = vpop.permute.xlu0 %439 }
  0xad   :  { %2865 = vst [vmem:[#allocation12_spill] sm:$0xff] %v2181_v37  ;;  %732 = vperm.xlu1 %1781, %v626_v34  }
  0xae   :  { %v2183_v38 = vpop.permute.xlu1 %642  ;;  %1157 = vperm.xlu0 %1790, %v1111_v36  }
  0xb0   :  { %v2188_v40 = vpop.permute.xlu0 %447 }
  0xb1   :  { %2866 = vst [vmem:[#allocation13_spill] sm:$0xff] %v2188_v40  ;;  %203 = vperm.xlu1 %1781, %v1967_v28   ;;  %v2204_v28 = vsub.s32 0, %v1903_v11 }
  0xb2   :  { %1162 = vperm.xlu0 %1790, %v1112_v39  }
  0xb3   :  { %v2194_v42 = vpop.permute.xlu1 %351  ;;  %2868 = vst [vmem:[#allocation15_spill] sm:$0xff] %v2204_v28  ;;  %v255_v54 = vrot.slane %v58_v50, %v2204_v28  ;;  %v2231_v13 = vrot.slane %v259_v55, %v2204_v28  ;;  %v2274_v50 = vmul.f32 %v2220_v63, %v2109_v1  ;;  %v2295_v1 = vmul.f32 %v2222_v2, %v2120_v8 }
  0xb4   :  { %v2199_v44 = vpop.permute.xlu0 %455 }
  0xb5   :  { %2867 = vst [vmem:[#allocation14_spill] sm:$0xff] %v2199_v44  ;;  %208 = vperm.xlu1 %1781, %v82_v41   ;;  %v2228_v9 = vrot.slane %v255_v54, %v2204_v28  ;;  %v277_v20 = vmul.f32 %v2231_v13, %v2099_v61  ;;  %v275_v39 = vmul.f32 %v2231_v13, %v2089_v57 }
  0xb6   :  { %1167 = vperm.xlu0 %1790, %v1113_v43   ;;  %v84_v43 = vld [vmem:[%s2841_s0 + $0xc8] sm:$0xff]  ;;  %v2287_v55 = vmul.f32 %v2231_v13, %v2118_v7 }
  0xb7   :  { %v2207_v48 = vpop.permute.xlu1 %355  ;;  %v276_v17 = vmul.f32 %v2228_v9, %v2099_v61  ;;  %v274_v36 = vmul.f32 %v2228_v9, %v2089_v57  ;;  %v481_v61 = vmul.f32 %v2222_v2, %v2091_v58  ;;  %v2264_v45 = vmul.f32 %v2228_v9, %v2107_v0 }
  0xb8   :  { %v551_v46 = vadd.f32 %v487_v24, %v277_v20  ;;  %v2283_v54 = vmul.f32 %v2228_v9, %v2118_v7  ;;  %v1118_v7 = vld [vmem:[%s2844_s3 + $0x70] sm:$0xff]  ;;  %v484_v24 = vmul.f32 %v2220_v63, %v2172_v32 }
  0xb9   :  { %1782 = vset.pattern.permute.xlu1 %v2854_v4  ;;  %v94_v53 = vpop.permute.xlu0 %93  ;;  %v550_v57 = vadd.f32 %v486_v23, %v276_v17  ;;  %v2311_v17 = vmul.f32 %v2228_v9, %v2133_v14 }
  0xba   :  { %427 = vperm.xlu1 %1782, %v82_v41   ;;  %1172 = vperm.xlu0 %1790, %v1114_v49   ;;  %v271_v41 = vmul.f32 %v2231_v13, %v94_v53  ;;  %v2270_v49 = vmul.f32 %v2231_v13, %v2107_v0  ;;  %v2291_v0 = vmul.f32 %v2220_v63, %v2120_v8 }
  0xbb   :  { %v2315_v8 = vmul.f32 %v2231_v13, %v2133_v14 }
  0xbc   :  { %v658_v56 = vpop.permute.xlu1 %657 }
  0xbd   :  { %v2224_v3 = vpop.permute.xlu0 %98  ;;  %v806_v6 = vadd.f32 %v658_v56, %v550_v57  ;;  %v807_v14 = vadd.f32 %v658_v56, %v551_v46  ;;  %v482_v56 = vmul.f32 %v2220_v63, %v2164_v26  ;;  %v483_v57 = vmul.f32 %v2222_v2, %v2164_v26  ;;  %v630_v26 = vld [vmem:[%s2842_s1 + $0xb0] sm:$0xff] }
  0xbe   :  { %1783 = vset.pattern.permute.xlu1 %v2851_v5  ;;  %1177 = vperm.xlu0 %1790, %v1115_v59   ;;  %v545_v59 = vadd.f32 %v481_v61, %v271_v41  ;;  %v485_v61 = vmul.f32 %v2222_v2, %v2172_v32  ;;  %v2331_v5 = vmul.f32 %v2228_v9, %v2144_v18 }
  0xbf   :  { %742 = vperm.xlu1 %1783, %v628_v60   ;;  %v2335_v32 = vmul.f32 %v2231_v13, %v2144_v18  ;;  %v490_v46 = vmul.f32 %v2220_v63, %v2207_v48  ;;  %vm871_vm2 = vcmp.gt.f32.partialorder %v807_v14, 0.0  ;;  %vm870_vm3 = vcmp.gt.f32.partialorder %v806_v6, 0.0 }
  0xc0   :  { %v801_v11 = vadd.f32 %v2183_v38, %v545_v59  ;;  %v491_v59 = vmul.f32 %v2222_v2, %v2207_v48  ;;  %v2359_v28 = vadd.f32 %v485_v61, %v275_v39 }
  0xc1   :  { %v2244_v27 = vpop.permute.xlu1 %363  ;;  %v114_v34 = vpop.permute.xlu0 %113 }
  0xc2   :  { %1182 = vperm.xlu0 %1790, %v1116_v16   ;;  %v279_v60 = vmul.f32 %v2231_v13, %v114_v34  ;;  %v2307_v16 = vmul.f32 %v2231_v13, %v2125_v10  ;;  %v278_v20 = vmul.f32 %v2228_v9, %v114_v34  ;;  %v495_v44 = vmul.f32 %v2222_v2, %v2244_v27 }
  0xc3   :  { %213 = vperm.xlu1 %1783, %v1977_v30   ;;  %v480_v30 = vmul.f32 %v2220_v63, %v2091_v58  ;;  %v270_v58 = vmul.f32 %v2228_v9, %v94_v53  ;;  %v2299_v53 = vmul.f32 %v2228_v9, %v2125_v10  ;;  %v489_v10 = vmul.f32 %v2222_v2, %v2194_v42 }
  0xc4   :  { %vm865_vm4 = vcmp.gt.f32.partialorder %v801_v11, 0.0  ;;  %v2373_v61 = vadd.f32 %v491_v59, %v2270_v49  ;;  %v1659_v49 = vld [vmem:[#allocation7] sm:$0x1] }
  0xc5   :  { %v2266_v47 = vpop.permute.xlu0 %123  ;;  %v544_v41 = vadd.f32 %v480_v30, %v270_v58  ;;  %v553_v30 = vadd.f32 %v489_v10, %v279_v60  ;;  %v272_v60 = vmul.f32 %v2228_v9, %v2224_v3  ;;  %v934_v10 = vmul.f32 0.2, %v806_v6 }
  0xc6   :  { %v663_v52 = vpop.permute.xlu1 %662  ;;  %1187 = vperm.xlu0 %1790, %v1117_v62   ;;  %v488_v62 = vmul.f32 %v2220_v63, %v2194_v42  ;;  %v1119_v42 = vld [vmem:[%s2844_s3 + $0x78] sm:$0xff] }
  0xc7   :  { %218 = vperm.xlu1 %1783, %v84_v43   ;;  %v809_v48 = vadd.f32 %v663_v52, %v553_v30  ;;  %v546_v39 = vadd.f32 %v482_v56, %v272_v60  ;;  %v494_v30 = vmul.f32 %v2220_v63, %v2244_v27  ;;  %v283_v56 = vmul.f32 %v2231_v13, %v2266_v47 }
  0xc8   :  { %v552_v58 = vadd.f32 %v488_v62, %v278_v20  ;;  %v2357_v62 = vadd.f32 %v484_v24, %v274_v36  ;;  %v2370_v36 = vadd.f32 %v490_v46, %v2264_v45  ;;  %v282_v45 = vmul.f32 %v2228_v9, %v2266_v47 }
  0xc9   :  { %v2318_v23 = vpop.permute.xlu0 %133  ;;  %v559_v60 = vadd.f32 %v495_v44, %v2287_v55  ;;  %vm873_vm6 = vcmp.gt.f32.partialorder %v809_v48, 0.0  ;;  %v558_v55 = vadd.f32 %v494_v30, %v2283_v54 }
  0xca   :  { %1192 = vperm.xlu0 %1790, %v1118_v7   ;;  %v273_v7 = vmul.f32 %v2231_v13, %v2224_v3  ;;  %v929_v3 = vmul.f32 0.2, %v801_v11  ;;  %v808_v40 = vadd.f32 %v663_v52, %v552_v58  ;;  %v2379_v52 = vsel %vm870_vm3, %v806_v6, %v934_v10 }
  0xcb   :  { %1784 = vset.pattern.permute.xlu1 %v2854_v4  ;;  %v368_v34 = vpop.permute.xlu1 %367  ;;  %v935_v4 = vmul.f32 0.2, %v807_v14  ;;  %v287_v6 = vmul.f32 %v2231_v13, %v2318_v23  ;;  %v2406_v10 = vadd.f32 %v2278_v51, %v283_v56 }
  0xcc   :  { %435 = vperm.xlu1 %1784, %v84_v43   ;;  %v800_v43 = vadd.f32 %v2183_v38, %v544_v41  ;;  %v2869_v38 = vmov 0   ;;  %v1503_v41 = vld [vmem:[%s2845_s4 + $0x70] sm:$0xff]  ;;  %v547_v24 = vadd.f32 %v483_v57, %v273_v7  ;;  %v937_v57 = vmul.f32 0.2, %v809_v48 }
  0xcd   :  { %v144_v18 = vpop.permute.xlu0 %143  ;;  %v2377_v29 = vsel %vm871_vm2, %v807_v14, %v935_v4  ;;  %v993_v58 = vsel %vm865_vm4, %v801_v11, %v929_v3  ;;  %v936_v59 = vmul.f32 0.2, %v808_v40  ;;  %vm872_vm7 = vcmp.gt.f32.partialorder %v808_v40, 0.0  ;;  %v86_v11 = vld [vmem:[%s2841_s0 + $0xd8] sm:$0xff] }
  0xce   :  { %1197 = vperm.xlu0 %1790, %v1119_v42   ;;  %vm864_vm5 = vcmp.gt.f32.partialorder %v800_v43, 0.0  ;;  %v928_v37 = vmul.f32 0.2, %v800_v43  ;;  %v286_v4 = vmul.f32 %v2228_v9, %v2318_v23  ;;  %v496_v47 = vmul.f32 %v2220_v63, %v368_v34 }
  0xcf   :  { %v372_v20 = vpop.permute.xlu1 %371  ;;  %v497_v14 = vmul.f32 %v2222_v2, %v368_v34  ;;  %v291_v44 = vmul.f32 %v2231_v13, %v144_v18  ;;  %v2403_v23 = vadd.f32 %v2274_v50, %v282_v45  ;;  %v2408_v34 = vsel %vm873_vm6, %v809_v48, %v937_v57 }
  0xd0   :  { %1785 = vset.pattern.permute.xlu1 %v2869_v38  ;;  %v499_v3 = vmul.f32 %v2222_v2, %v372_v20  ;;  %v2413_v30 = vsel %vm872_vm7, %v808_v40, %v936_v59  ;;  %v560_v50 = vadd.f32 %v496_v47, %v286_v4 }
  0xd1   :  { %752 = vperm.xlu1 %1785, %v630_v26   ;;  %v2367_v42 = vpop.permute.xlu0 %153  ;;  %v992_v26 = vsel %vm864_vm5, %v800_v43, %v928_v37  ;;  %v561_v45 = vadd.f32 %v497_v14, %v287_v6  ;;  %v2419_v48 = vadd.f32 %v2295_v1, %v291_v44 }
  0xd2   :  { %1577 = vperm.xlu0 %1790, %v1503_v41   ;;  %v498_v41 = vmul.f32 %v2220_v63, %v372_v20 }
  0xd4   :  { %v678_v46 = vpop.permute.xlu1 %677 }
  0xd5   :  { %223 = vperm.xlu1 %1785, %v1983_v31   ;;  %v2387_v27 = vpop.permute.xlu0 %163  ;;  %v290_v31 = vmul.f32 %v2228_v9, %v144_v18  ;;  %v815_v7 = vadd.f32 %v678_v46, %v559_v60  ;;  %v814_v25 = vadd.f32 %v678_v46, %v558_v55  ;;  %v2870_v46 = vmov 1  }
  0xd6   :  { %1662 = vperm.xlu0 %1790, %v1659_v49  }
  0xd7   :  { %v943_v49 = vmul.f32 0.2, %v815_v7  ;;  %v2416_v51 = vadd.f32 %v2291_v0, %v290_v31  ;;  %vm879_vm8 = vcmp.gt.f32.partialorder %v815_v7, 0.0  ;;  %v942_v57 = vmul.f32 0.2, %v814_v25 }
  0xd8   :  { %vm878_vm11 = vcmp.gt.f32.partialorder %v814_v25, 0.0 }
  0xd9   :  { %228 = vperm.xlu1 %1785, %v86_v11   ;;  %v380_v18 = vpop.permute.xlu1 %379  ;;  %v648_v54 = vpop.permute.xlu0 %647  ;;  %v2434_v31 = vsel %vm879_vm8, %v815_v7, %v943_v49 }
  0xda   :  { %v802_v37 = vadd.f32 %v648_v54, %v546_v39  ;;  %v803_v43 = vadd.f32 %v648_v54, %v547_v24  ;;  %v2423_v39 = vadd.f32 %v498_v41, %v2299_v53  ;;  %v2426_v24 = vadd.f32 %v499_v3, %v2307_v16  ;;  %v632_v53 = vld [vmem:[%s2842_s1 + $0xc0] sm:$0xff] }
  0xdb   :  { %v503_v41 = vmul.f32 %v2222_v2, %v380_v18 }
  0xdc   :  { %v930_v20 = vmul.f32 0.2, %v802_v37  ;;  %v931_v56 = vmul.f32 0.2, %v803_v43  ;;  %vm867_vm9 = vcmp.gt.f32.partialorder %v803_v43, 0.0  ;;  %vm866_vm10 = vcmp.gt.f32.partialorder %v802_v37, 0.0 }
  0xdd   :  { %1786 = vset.pattern.permute.xlu1 %v2870_v46  ;;  %v653_v40 = vpop.permute.xlu0 %652 }
  0xde   :  { %v804_v0 = vadd.f32 %v653_v40, %v2357_v62  ;;  %v805_v1 = vadd.f32 %v653_v40, %v2359_v28  ;;  %443 = vperm.xlu1 %1786, %v86_v11   ;;  %v683_v59 = vpop.permute.xlu1 %682  ;;  %v995_v60 = vsel %vm867_vm9, %v803_v43, %v931_v56  ;;  %v994_v4 = vsel %vm866_vm10, %v802_v37, %v930_v20 }
  0xdf   :  { %v816_v6 = vadd.f32 %v683_v59, %v560_v50  ;;  %v1073_v47 = vpack.c.bf16 %v995_v60, %v993_v58  ;;  %v1072_v14 = vpack.c.bf16 %v994_v4, %v992_v26  ;;  %v502_v28 = vmul.f32 %v2220_v63, %v380_v18 }
  0xe0   :  { %vm868_vm12 = vcmp.gt.f32.partialorder %v804_v0, 0.0  ;;  %vm869_vm13 = vcmp.gt.f32.partialorder %v805_v1, 0.0  ;;  %v932_v16 = vmul.f32 0.2, %v804_v0  ;;  %v933_v62 = vmul.f32 0.2, %v805_v1 }
  0xe1   :  { %v817_v11 = vadd.f32 %v683_v59, %v561_v45  ;;  %v668_v44 = vpop.permute.xlu0 %667  ;;  %1280 = vmatprep.subr.bf16.mxu0 %v1073_v47  ;;  %1725 = vmatprep.subr.bf16.mxu1 %v1073_v47  ;;  %v1006_v58 = vsel %vm878_vm11, %v814_v25, %v942_v57  ;;  %v944_v3 = vmul.f32 0.2, %v816_v6  ;;  %vm880_vm1 = vcmp.gt.f32.partialorder %v816_v6, 0.0 }
  0xe2   :  { %v810_v55 = vadd.f32 %v668_v44, %v2370_v36  ;;  %v811_v26 = vadd.f32 %v668_v44, %v2373_v61  ;;  %1787 = vset.pattern.permute.xlu1 %v2869_v38  ;;  %1281 = vmatpush1.bf16.msra.mxu0 %v1072_v14  ;;  %v997_v7 = vsel %vm869_vm13, %v805_v1, %v933_v62 }
  0xe3   :  { %1741 = vmatpush1.bf16.msra.mxu1 %v1072_v14  ;;  %762 = vperm.xlu1 %1787, %v632_v53   ;;  %v2442_v54 = vpop.permute.xlu1 %383  ;;  %v1075_v37 = vpack.c.bf16 %v2377_v29, %v997_v7  ;;  %v996_v43 = vsel %vm868_vm12, %v804_v0, %v932_v16  ;;  %v945_v61 = vmul.f32 0.2, %v817_v11  ;;  %vm881_vm0 = vcmp.gt.f32.partialorder %v817_v11, 0.0 }
  0xe4   :  { %vm874_vm14 = vcmp.gt.f32.partialorder %v810_v55, 0.0  ;;  %vm875_vm15 = vcmp.gt.f32.partialorder %v811_v26, 0.0  ;;  %v938_v25 = vmul.f32 0.2, %v810_v55  ;;  %v939_v36 = vmul.f32 0.2, %v811_v26 }
  0xe5   :  { %v673_v50 = vpop.permute.xlu0 %672  ;;  %1282 = vmatprep.subr.bf16.mxu0 %v1075_v37  ;;  %1726 = vmatprep.subr.bf16.mxu1 %v1075_v37  ;;  %v1074_v45 = vpack.c.bf16 %v2379_v52, %v996_v43  ;;  %v566_v0 = vadd.f32 %v502_v28, %v2311_v17  ;;  %v567_v59 = vadd.f32 %v503_v41, %v2315_v8 }
  0xe6   :  { %v812_v18 = vadd.f32 %v673_v50, %v2403_v23  ;;  %v813_v49 = vadd.f32 %v673_v50, %v2406_v10  ;;  %v1003_v20 = vsel %vm875_vm15, %v811_v26, %v939_v36  ;;  %v1002_v29 = vsel %vm874_vm14, %v810_v55, %v938_v25  ;;  %v88_v10 = vld [vmem:[%s2841_s0 + $0xe8] sm:$0xff] }
  0xe7   :  { %1283 = vmatpush1.bf16.msra.mxu0 %v1074_v45  ;;  %1742 = vmatpush1.bf16.msra.mxu1 %v1074_v45  ;;  %v388_v56 = vpop.permute.xlu1 %387  ;;  %v1077_v57 = vpack.c.bf16 %v1003_v20, %v2408_v34  ;;  %v1076_v40 = vpack.c.bf16 %v1002_v29, %v2413_v30  ;;  %v1009_v34 = vsel %vm881_vm0, %v817_v11, %v945_v61 }
  0xe8   :  { %vm876_vm2 = vcmp.gt.f32.partialorder %v812_v18, 0.0  ;;  %vm877_vm3 = vcmp.gt.f32.partialorder %v813_v49, 0.0  ;;  %v940_v52 = vmul.f32 0.2, %v812_v18  ;;  %v941_v1 = vmul.f32 0.2, %v813_v49  ;;  %233 = vperm.xlu1 %1787, %v1993_v33  }
  0xe9   :  { %v688_v23 = vpop.permute.xlu0 %687  ;;  %1284 = vmatprep.subr.bf16.mxu0 %v1077_v57  ;;  %1727 = vmatprep.subr.bf16.mxu1 %v1077_v57  ;;  %v1008_v30 = vsel %vm880_vm1, %v816_v6, %v944_v3  ;;  %v506_v33 = vmul.f32 %v2220_v63, %v388_v56  ;;  %v507_v6 = vmul.f32 %v2222_v2, %v388_v56 }
  0xea   :  { %v818_v17 = vadd.f32 %v688_v23, %v2423_v39  ;;  %v819_v60 = vadd.f32 %v688_v23, %v2426_v24  ;;  %v1005_v4 = vsel %vm877_vm3, %v813_v49, %v941_v1  ;;  %v1004_v47 = vsel %vm876_vm2, %v812_v18, %v940_v52 }
  0xeb   :  { %1285 = vmatpush1.bf16.msra.mxu0 %v1076_v40  ;;  %1743 = vmatpush1.bf16.msra.mxu1 %v1076_v40  ;;  %v1079_v14 = vpack.c.bf16 %v2434_v31, %v1005_v4  ;;  %v1078_v53 = vpack.c.bf16 %v1006_v58, %v1004_v47  ;;  %v294_v58 = vmul.f32 %v2228_v9, %v2367_v42 }
  0xec   :  { %vm882_vm4 = vcmp.gt.f32.partialorder %v818_v17, 0.0  ;;  %vm883_vm5 = vcmp.gt.f32.partialorder %v819_v60, 0.0  ;;  %v946_v8 = vmul.f32 0.2, %v818_v17  ;;  %v947_v16 = vmul.f32 0.2, %v819_v60  ;;  %238 = vperm.xlu1 %1787, %v88_v10   ;;  %v698_v62 = vpop.permute.xlu1 %697 }
  0xed   :  { %v822_v39 = vadd.f32 %v698_v62, %v566_v0  ;;  %v823_v28 = vadd.f32 %v698_v62, %v567_v59  ;;  %v693_v24 = vpop.permute.xlu0 %692  ;;  %1286 = vmatprep.subr.bf16.mxu0 %v1079_v14  ;;  %1728 = vmatprep.subr.bf16.mxu1 %v1079_v14  ;;  %v505_v61 = vmul.f32 %v2222_v2, %v2442_v54 }
  0xee   :  { %v820_v11 = vadd.f32 %v693_v24, %v2416_v51  ;;  %v821_v44 = vadd.f32 %v693_v24, %v2419_v48  ;;  %v1011_v55 = vsel %vm883_vm5, %v819_v60, %v947_v16  ;;  %v1010_v31 = vsel %vm882_vm4, %v818_v17, %v946_v8  ;;  %v90_v17 = vld [vmem:[%s2841_s0 + $0xf8] sm:$0xff] }
  0xef   :  { %v951_v26 = vmul.f32 0.2, %v823_v28  ;;  %1287 = vmatpush1.bf16.msra.mxu0 %v1078_v53  ;;  %1744 = vmatpush1.bf16.msra.mxu1 %v1078_v53  ;;  %v1081_v7 = vpack.c.bf16 %v1011_v55, %v1009_v34  ;;  %v1080_v41 = vpack.c.bf16 %v1010_v31, %v1008_v30  ;;  %v295_v51 = vmul.f32 %v2231_v13, %v2367_v42  ;;  %v634_v42 = vld [vmem:[%s2842_s1 + $0xd0] sm:$0xff] }
  0xf0   :  { %vm884_vm6 = vcmp.gt.f32.partialorder %v820_v11, 0.0  ;;  %vm885_vm7 = vcmp.gt.f32.partialorder %v821_v44, 0.0  ;;  %v948_v3 = vmul.f32 0.2, %v820_v11  ;;  %v949_v37 = vmul.f32 0.2, %v821_v44  ;;  %1788 = vset.pattern.permute.xlu1 %v2870_v46 }
  0xf1   :  { %v504_v48 = vmul.f32 %v2220_v63, %v2442_v54  ;;  %v950_v43 = vmul.f32 0.2, %v822_v39  ;;  %451 = vperm.xlu1 %1788, %v88_v10   ;;  %v396_v25 = vpop.permute.xlu1 %395  ;;  %v708_v36 = vpop.permute.xlu0 %707  ;;  %1288 = vmatprep.subr.bf16.mxu0 %v1081_v7  ;;  %vm887_vm8 = vcmp.gt.f32.partialorder %v823_v28, 0.0  ;;  %v570_v50 = vadd.f32 %v506_v33, %v2331_v5 }
  0xf2   :  { %v571_v45 = vadd.f32 %v507_v6, %v2335_v32  ;;  %1729 = vmatprep.subr.bf16.mxu1 %v1081_v7  ;;  %vm886_vm9 = vcmp.gt.f32.partialorder %v822_v39, 0.0  ;;  %v1013_v18 = vsel %vm885_vm7, %v821_v44, %v949_v37  ;;  %v1015_v49 = vsel %vm887_vm8, %v823_v28, %v951_v26 }
  0xf3   :  { %1289 = vmatpush1.bf16.msra.mxu0 %v1080_v41  ;;  %1745 = vmatpush1.bf16.msra.mxu1 %v1080_v41  ;;  %v1012_v20 = vsel %vm884_vm6, %v820_v11, %v948_v3  ;;  %v826_v29 = vadd.f32 %v708_v36, %v570_v50  ;;  %v1083_v5 = vpack.c.bf16 %v1015_v49, %v1013_v18 }
  0xf4   :  { %v827_v56 = vadd.f32 %v708_v36, %v571_v45  ;;  %v568_v54 = vadd.f32 %v504_v48, %v294_v58  ;;  %v1014_v32 = vsel %vm886_vm9, %v822_v39, %v950_v43  ;;  %v569_v40 = vadd.f32 %v505_v61, %v295_v51  ;;  %v639_v36 = vld [vmem:[%s2842_s1 + $0xf8] sm:$0xff] }
  0xf5   :  { %1789 = vset.pattern.permute.xlu1 %v2869_v38  ;;  %v1082_v0 = vpack.c.bf16 %v1014_v32, %v1012_v20  ;;  %1290 = vmatprep.subr.bf16.mxu0 %v1083_v5  ;;  %v954_v1 = vmul.f32 0.2, %v826_v29  ;;  %vm890_vm10 = vcmp.gt.f32.partialorder %v826_v29, 0.0  ;;  %v510_v14 = vmul.f32 %v2220_v63, %v396_v25  ;;  %v718_v24 = vpop.permute.xlu0 %717  ;;  %v1105_v32 = vld [vmem:[%s2844_s3 + $0x8] sm:$0xff] }
  0xf6   :  { %772 = vperm.xlu1 %1789, %v634_v42   ;;  %v703_v57 = vpop.permute.xlu1 %702  ;;  %1730 = vmatprep.subr.bf16.mxu1 %v1083_v5  ;;  %v955_v23 = vmul.f32 0.2, %v827_v56  ;;  %vm891_vm11 = vcmp.gt.f32.partialorder %v827_v56, 0.0  ;;  %v511_v53 = vmul.f32 %v2222_v2, %v396_v25  ;;  %v300_v62 = vmul.f32 %v2228_v9, %v2152_v21 }
  0xf7   :  { %v824_v52 = vadd.f32 %v703_v57, %v568_v54  ;;  %v825_v10 = vadd.f32 %v703_v57, %v569_v40  ;;  %1291 = vmatpush1.bf16.msra.mxu0 %v1082_v0  ;;  %1746 = vmatpush1.bf16.msra.mxu1 %v1082_v0  ;;  %v1018_v33 = vsel %vm890_vm10, %v826_v29, %v954_v1 }
  0xf8   :  { %v1019_v4 = vsel %vm891_vm11, %v827_v56, %v955_v23  ;;  %v301_v6 = vmul.f32 %v2231_v13, %v2152_v21  ;;  %v574_v39 = vadd.f32 %v510_v14, %v300_v62  ;;  %v508_v11 = vmul.f32 %v2220_v63, %v2127_v12  ;;  %v1491_v62 = vld [vmem:[%s2845_s4 + $0x10] sm:$0xff] }
  0xf9   :  { %v952_v59 = vmul.f32 0.2, %v824_v52  ;;  %v953_v34 = vmul.f32 0.2, %v825_v10  ;;  %vm889_vm12 = vcmp.gt.f32.partialorder %v825_v10, 0.0  ;;  %vm888_vm13 = vcmp.gt.f32.partialorder %v824_v52, 0.0 }
  0xfa   :  { %243 = vperm.xlu1 %1789, %v2002_v35   ;;  %v2484_v30 = vpop.permute.xlu1 %173  ;;  %v575_v28 = vadd.f32 %v511_v53, %v301_v6  ;;  %v509_v44 = vmul.f32 %v2222_v2, %v2127_v12  ;;  %v298_v55 = vmul.f32 %v2228_v9, %v2387_v27  ;;  %v299_v21 = vmul.f32 %v2231_v13, %v2387_v27  ;;  %v638_v27 = vld [vmem:[%s2842_s1 + $0xf0] sm:$0xff] }
  0xfb   :  { %v1017_v60 = vsel %vm889_vm12, %v825_v10, %v953_v34  ;;  %v1016_v47 = vsel %vm888_vm13, %v824_v52, %v952_v59  ;;  %v830_v58 = vadd.f32 %v718_v24, %v574_v39  ;;  %v512_v0 = vmul.f32 %v2220_v63, %v2135_v15  ;;  %v1107_v59 = vld [vmem:[%s2844_s3 + $0x18] sm:$0xff]  ;;  %v728_v34 = vpop.permute.xlu0 %727 }
  0xfc   :  { %v1085_v8 = vpack.c.bf16 %v1019_v4, %v1017_v60  ;;  %v1084_v16 = vpack.c.bf16 %v1018_v33, %v1016_v47  ;;  %v831_v26 = vadd.f32 %v718_v24, %v575_v28  ;;  %v572_v7 = vadd.f32 %v508_v11, %v298_v55  ;;  %v1795_v4 = vld [vmem:[%s2843_s2 + $0x4] ss:$8 sps:$4 sm:$0xff]  }
  0xfd   :  { %v573_v41 = vadd.f32 %v509_v44, %v299_v21  ;;  %v958_v3 = vmul.f32 0.2, %v830_v58  ;;  %vm894_vm14 = vcmp.gt.f32.partialorder %v830_v58, 0.0  ;;  %v513_v52 = vmul.f32 %v2222_v2, %v2135_v15  ;;  %v1490_v33 = vld [vmem:[%s2845_s4 + $0x8] sm:$0xff]  ;;  %1312 = vmatprep.mubr.bf16.mxu0 %v1795_v4 }
  0xfe   :  { %248 = vperm.xlu1 %1789, %v90_v17   ;;  %v179_v35 = vpop.permute.xlu1 %178  ;;  %1292 = vmatprep.subr.bf16.mxu0 %v1085_v8  ;;  %v959_v37 = vmul.f32 0.2, %v831_v26  ;;  %vm895_vm15 = vcmp.gt.f32.partialorder %v831_v26, 0.0  ;;  %v302_v1 = vmul.f32 %v2228_v9, %v2484_v30  ;;  %v303_v23 = vmul.f32 %v2231_v13, %v2484_v30  ;;  %v1798_v30 = vld [vmem:[%s2843_s2 + $0x44] ss:$8 sps:$4 sm:$0xff]  }
  0xff   :  { %1731 = vmatprep.subr.bf16.mxu1 %v1085_v8  ;;  %1293 = vmatpush1.bf16.msra.mxu0 %v1084_v16  ;;  %v1022_v42 = vsel %vm894_vm14, %v830_v58, %v958_v3  ;;  %v304_v5 = vmul.f32 %v2228_v9, %v179_v35  ;;  %v305_v54 = vmul.f32 %v2231_v13, %v179_v35 }
 0x100   :  { %1747 = vmatpush1.bf16.msra.mxu1 %v1084_v16  ;;  %v1023_v50 = vsel %vm895_vm15, %v831_v26, %v959_v37  ;;  %v576_v15 = vadd.f32 %v512_v0, %v302_v1  ;;  %v577_v47 = vadd.f32 %v513_v52, %v303_v23  ;;  %1352 = vmatprep.mubr.bf16.mxu1 %v1798_v30 }
 0x102   :  { %1791 = vset.pattern.permute.xlu1 %v2870_v46  ;;  %v636_v46 = vld [vmem:[%s2842_s1 + $0xe0] sm:$0xff] }
 0x103   :  { %459 = vperm.xlu1 %1791, %v90_v17   ;;  %v404_v31 = vpop.permute.xlu1 %403 }
 0x104   :  { %v514_v20 = vmul.f32 %v2220_v63, %v404_v31  ;;  %v515_v29 = vmul.f32 %v2222_v2, %v404_v31 }
 0x106   :  { %v578_v57 = vadd.f32 %v514_v20, %v304_v5  ;;  %v579_v40 = vadd.f32 %v515_v29, %v305_v54 }
 0x107   :  { %1792 = vset.pattern.permute.xlu1 %v2869_v38 }
 0x108   :  { %782 = vperm.xlu1 %1792, %v636_v46   ;;  %v713_v12 = vpop.permute.xlu1 %712  ;;  %v834_v17 = vadd.f32 %v728_v34, %v578_v57  ;;  %v835_v60 = vadd.f32 %v728_v34, %v579_v40  ;;  %v1492_v46 = vld [vmem:[%s2845_s4 + $0x18] sm:$0xff] }
 0x109   :  { %v828_v51 = vadd.f32 %v713_v12, %v572_v7  ;;  %v829_v48 = vadd.f32 %v713_v12, %v573_v41  ;;  %v1496_v40 = vld [vmem:[%s2845_s4 + $0x38] sm:$0xff] }
 0x10a   :  { %v963_v16 = vmul.f32 0.2, %v835_v60  ;;  %v962_v35 = vmul.f32 0.2, %v834_v17  ;;  %vm899_vm2 = vcmp.gt.f32.partialorder %v835_v60, 0.0  ;;  %vm898_vm3 = vcmp.gt.f32.partialorder %v834_v17, 0.0 }
 0x10b   :  { %vm892_vm0 = vcmp.gt.f32.partialorder %v828_v51, 0.0  ;;  %vm893_vm1 = vcmp.gt.f32.partialorder %v829_v48, 0.0  ;;  %v956_v43 = vmul.f32 0.2, %v828_v51  ;;  %v957_v25 = vmul.f32 0.2, %v829_v48 }
 0x10c   :  { %792 = vperm.xlu1 %1792, %v638_v27   ;;  %v2511_v38 = vpop.permute.xlu1 %183  ;;  %v1027_v11 = vsel %vm899_vm2, %v835_v60, %v963_v16  ;;  %v1026_v55 = vsel %vm898_vm3, %v834_v17, %v962_v35  ;;  %v1498_v16 = vld [vmem:[%s2845_s4 + $0x48] sm:$0xff] }
 0x10d   :  { %v1021_v61 = vsel %vm893_vm1, %v829_v48, %v957_v25  ;;  %v1020_v45 = vsel %vm892_vm0, %v828_v51, %v956_v43  ;;  %v1493_v51 = vld [vmem:[%s2845_s4 + $0x20] sm:$0xff]  ;;  %v306_v48 = vmul.f32 %v2228_v9, %v2511_v38  ;;  %v307_v27 = vmul.f32 %v2231_v13, %v2511_v38  ;;  %v738_v25 = vpop.permute.xlu0 %737 }
 0x10e   :  { %v1087_v18 = vpack.c.bf16 %v1023_v50, %v1021_v61  ;;  %v1086_v49 = vpack.c.bf16 %v1022_v42, %v1020_v45  ;;  %v517_v61 = vmul.f32 %v2222_v2, %v2146_v19  ;;  %v1494_v42 = vld [vmem:[%s2845_s4 + $0x28] sm:$0xff] }
 0x110   :  { %797 = vperm.xlu1 %1792, %v639_v36   ;;  %v189_v56 = vpop.permute.xlu1 %188  ;;  %1294 = vmatprep.subr.bf16.mxu0 %v1087_v18  ;;  %v516_v36 = vmul.f32 %v2220_v63, %v2146_v19 }
 0x111   :  { %1732 = vmatprep.subr.bf16.mxu1 %v1087_v18  ;;  %1295 = vmatpush1.bf16.msra.mxu0 %v1086_v49  ;;  %v308_v41 = vmul.f32 %v2228_v9, %v189_v56  ;;  %v309_v12 = vmul.f32 %v2231_v13, %v189_v56  ;;  %v1495_v56 = vld [vmem:[%s2845_s4 + $0x30] sm:$0xff]  ;;  %v748_v35 = vpop.permute.xlu0 %747 }
 0x112   :  { %1748 = vmatpush1.bf16.msra.mxu1 %v1086_v49  ;;  %v580_v18 = vadd.f32 %v516_v36, %v306_v48  ;;  %v581_v49 = vadd.f32 %v517_v61, %v307_v27  ;;  %v1501_v36 = vld [vmem:[%s2845_s4 + $0x60] sm:$0xff] }
 0x114   :  { %1127 = vperm.xlu1 %1792, %v1105_v32  }
 0x115   :  { %v412_v10 = vpop.permute.xlu1 %411 }
 0x116   :  { %v518_v58 = vmul.f32 %v2220_v63, %v412_v10  ;;  %v519_v26 = vmul.f32 %v2222_v2, %v412_v10 }
 0x118   :  { %1137 = vperm.xlu1 %1792, %v1107_v59   ;;  %v582_v3 = vadd.f32 %v518_v58, %v308_v41  ;;  %v583_v37 = vadd.f32 %v519_v26, %v309_v12 }
 0x11a   :  { %v723_v14 = vpop.permute.xlu1 %722  ;;  %v838_v50 = vadd.f32 %v738_v25, %v582_v3  ;;  %v839_v45 = vadd.f32 %v738_v25, %v583_v37 }
 0x11b   :  { %v832_v53 = vadd.f32 %v723_v14, %v576_v15  ;;  %v833_v8 = vadd.f32 %v723_v14, %v577_v47  ;;  %v1497_v47 = vld [vmem:[%s2845_s4 + $0x40] sm:$0xff] }
 0x11c   :  { %1512 = vperm.xlu1 %1792, %v1490_v33   ;;  %v967_v5 = vmul.f32 0.2, %v839_v45  ;;  %v966_v54 = vmul.f32 0.2, %v838_v50  ;;  %vm903_vm6 = vcmp.gt.f32.partialorder %v839_v45, 0.0  ;;  %vm902_vm7 = vcmp.gt.f32.partialorder %v838_v50, 0.0 }
 0x11d   :  { %vm896_vm4 = vcmp.gt.f32.partialorder %v832_v53, 0.0  ;;  %vm897_vm5 = vcmp.gt.f32.partialorder %v833_v8, 0.0  ;;  %v960_v6 = vmul.f32 0.2, %v832_v53  ;;  %v961_v39 = vmul.f32 0.2, %v833_v8 }
 0x11e   :  { %v2546_v28 = vpop.permute.xlu1 %193  ;;  %v1031_v52 = vsel %vm903_vm6, %v839_v45, %v967_v5  ;;  %v1030_v23 = vsel %vm902_vm7, %v838_v50, %v966_v54  ;;  %v2871_v5 = vld [vmem:[#allocation10_spill] sm:$0xff] }
 0x11f   :  { %v1025_v24 = vsel %vm897_vm5, %v833_v8, %v961_v39  ;;  %v1024_v44 = vsel %vm896_vm4, %v832_v53, %v960_v6  ;;  %v310_v14 = vmul.f32 %v2228_v9, %v2546_v28  ;;  %v311_v53 = vmul.f32 %v2231_v13, %v2546_v28  ;;  %v1499_v28 = vld [vmem:[%s2845_s4 + $0x50] sm:$0xff] }
 0x120   :  { %1517 = vperm.xlu1 %1792, %v1491_v62   ;;  %v1089_v21 = vpack.c.bf16 %v1027_v11, %v1025_v24  ;;  %v1088_v31 = vpack.c.bf16 %v1026_v55, %v1024_v44  ;;  %v520_v62 = vmul.f32 %v2220_v63, %v2154_v22  ;;  %v521_v6 = vmul.f32 %v2222_v2, %v2154_v22 }
 0x121   :  { %v524_v54 = vmul.f32 %v2220_v63, %v2871_v5 }
 0x122   :  { %v199_v7 = vpop.permute.xlu1 %198  ;;  %1296 = vmatprep.subr.bf16.mxu0 %v1089_v21  ;;  %1733 = vmatprep.subr.bf16.mxu1 %v1089_v21  ;;  %v584_v11 = vadd.f32 %v520_v62, %v310_v14  ;;  %v585_v44 = vadd.f32 %v521_v6, %v311_v53 }
 0x123   :  { %1297 = vmatpush1.bf16.msra.mxu0 %v1088_v31  ;;  %1749 = vmatpush1.bf16.msra.mxu1 %v1088_v31  ;;  %v312_v4 = vmul.f32 %v2228_v9, %v199_v7  ;;  %v313_v15 = vmul.f32 %v2231_v13, %v199_v7 }
 0x124   :  { %1522 = vperm.xlu1 %1792, %v1492_v46   ;;  %v1500_v46 = vld [vmem:[%s2845_s4 + $0x58] sm:$0xff] }
 0x127   :  { %v420_v43 = vpop.permute.xlu1 %419 }
 0x128   :  { %1527 = vperm.xlu1 %1792, %v1493_v51   ;;  %v522_v34 = vmul.f32 %v2220_v63, %v420_v43  ;;  %v523_v17 = vmul.f32 %v2222_v2, %v420_v43 }
 0x12a   :  { %v586_v33 = vadd.f32 %v522_v34, %v312_v4  ;;  %v587_v30 = vadd.f32 %v523_v17, %v313_v15 }
 0x12c   :  { %1532 = vperm.xlu1 %1792, %v1494_v42   ;;  %v733_v20 = vpop.permute.xlu1 %732  ;;  %v842_v39 = vadd.f32 %v748_v35, %v586_v33  ;;  %v843_v24 = vadd.f32 %v748_v35, %v587_v30 }
 0x12d   :  { %v836_v38 = vadd.f32 %v733_v20, %v580_v18  ;;  %v837_v29 = vadd.f32 %v733_v20, %v581_v49  ;;  %v1502_v49 = vld [vmem:[%s2845_s4 + $0x68] sm:$0xff] }
 0x12e   :  { %v971_v58 = vmul.f32 0.2, %v843_v24  ;;  %v970_v26 = vmul.f32 0.2, %v842_v39  ;;  %vm907_vm10 = vcmp.gt.f32.partialorder %v843_v24, 0.0  ;;  %vm906_vm11 = vcmp.gt.f32.partialorder %v842_v39, 0.0 }
 0x12f   :  { %vm900_vm8 = vcmp.gt.f32.partialorder %v836_v38, 0.0  ;;  %vm901_vm9 = vcmp.gt.f32.partialorder %v837_v29, 0.0  ;;  %v964_v19 = vmul.f32 0.2, %v836_v38  ;;  %v965_v32 = vmul.f32 0.2, %v837_v29 }
 0x130   :  { %1537 = vperm.xlu1 %1792, %v1495_v56   ;;  %v2572_v57 = vpop.permute.xlu1 %203  ;;  %v1035_v3 = vsel %vm907_vm10, %v843_v24, %v971_v58  ;;  %v1034_v51 = vsel %vm906_vm11, %v842_v39, %v970_v26  ;;  %v758_v56 = vpop.permute.xlu0 %757 }
 0x131   :  { %v1029_v0 = vsel %vm901_vm9, %v837_v29, %v965_v32  ;;  %v1028_v1 = vsel %vm900_vm8, %v836_v38, %v964_v19  ;;  %v314_v20 = vmul.f32 %v2228_v9, %v2572_v57  ;;  %v315_v38 = vmul.f32 %v2231_v13, %v2572_v57 }
 0x132   :  { %v1091_v10 = vpack.c.bf16 %v1031_v52, %v1029_v0  ;;  %v1090_v59 = vpack.c.bf16 %v1030_v23, %v1028_v1  ;;  %v525_v19 = vmul.f32 %v2222_v2, %v2871_v5  ;;  %v1504_v0 = vld [vmem:[%s2845_s4 + $0x78] sm:$0xff] }
 0x133   :  { %v588_v52 = vadd.f32 %v524_v54, %v314_v20 }
 0x134   :  { %1542 = vperm.xlu1 %1792, %v1496_v40   ;;  %v209_v60 = vpop.permute.xlu1 %208  ;;  %1298 = vmatprep.subr.bf16.mxu0 %v1091_v10  ;;  %v589_v1 = vadd.f32 %v525_v19, %v315_v38 }
 0x135   :  { %1734 = vmatprep.subr.bf16.mxu1 %v1091_v10  ;;  %1299 = vmatpush1.bf16.msra.mxu0 %v1090_v59  ;;  %v316_v50 = vmul.f32 %v2228_v9, %v209_v60  ;;  %v317_v45 = vmul.f32 %v2231_v13, %v209_v60 }
 0x136   :  { %1750 = vmatpush1.bf16.msra.mxu1 %v1090_v59 }
 0x138   :  { %1547 = vperm.xlu1 %1792, %v1497_v47  }
 0x139   :  { %v428_v8 = vpop.permute.xlu1 %427 }
 0x13a   :  { %v526_v43 = vmul.f32 %v2220_v63, %v428_v8  ;;  %v527_v25 = vmul.f32 %v2222_v2, %v428_v8 }
 0x13c   :  { %1552 = vperm.xlu1 %1792, %v1498_v16   ;;  %v590_v42 = vadd.f32 %v526_v43, %v316_v50  ;;  %v591_v18 = vadd.f32 %v527_v25, %v317_v45 }
 0x13e   :  { %v743_v55 = vpop.permute.xlu1 %742  ;;  %v846_v32 = vadd.f32 %v758_v56, %v590_v42  ;;  %v847_v40 = vadd.f32 %v758_v56, %v591_v18 }
 0x13f   :  { %v840_v21 = vadd.f32 %v743_v55, %v584_v11  ;;  %v841_v31 = vadd.f32 %v743_v55, %v585_v44  ;;  %v768_v55 = vpop.permute.xlu0 %767 }
 0x140   :  { %1557 = vperm.xlu1 %1792, %v1499_v28   ;;  %v975_v59 = vmul.f32 0.2, %v847_v40  ;;  %v974_v34 = vmul.f32 0.2, %v846_v32  ;;  %vm911_vm14 = vcmp.gt.f32.partialorder %v847_v40, 0.0  ;;  %vm910_vm15 = vcmp.gt.f32.partialorder %v846_v32, 0.0 }
 0x141   :  { %vm904_vm12 = vcmp.gt.f32.partialorder %v840_v21, 0.0  ;;  %vm905_vm13 = vcmp.gt.f32.partialorder %v841_v31, 0.0  ;;  %v968_v22 = vmul.f32 0.2, %v840_v21  ;;  %v969_v7 = vmul.f32 0.2, %v841_v31 }
 0x142   :  { %v2601_v41 = vpop.permute.xlu1 %213  ;;  %v1039_v47 = vsel %vm911_vm14, %v847_v40, %v975_v59  ;;  %v1038_v30 = vsel %vm910_vm15, %v846_v32, %v974_v34 }
 0x143   :  { %v1033_v12 = vsel %vm905_vm13, %v841_v31, %v969_v7  ;;  %v1032_v37 = vsel %vm904_vm12, %v840_v21, %v968_v22  ;;  %v318_v11 = vmul.f32 %v2228_v9, %v2601_v41  ;;  %v319_v44 = vmul.f32 %v2231_v13, %v2601_v41  ;;  %v2872_v21 = vld [vmem:[#allocation11_spill] sm:$0xff]  ;;  %v778_v40 = vpop.permute.xlu0 %777 }
 0x144   :  { %1562 = vperm.xlu1 %1792, %v1500_v46   ;;  %v1093_v48 = vpack.c.bf16 %v1035_v3, %v1033_v12  ;;  %v1092_v27 = vpack.c.bf16 %v1034_v51, %v1032_v37  ;;  %v528_v31 = vmul.f32 %v2220_v63, %v2872_v21  ;;  %v529_v58 = vmul.f32 %v2222_v2, %v2872_v21 }
 0x146   :  { %v219_v61 = vpop.permute.xlu1 %218  ;;  %1300 = vmatprep.subr.bf16.mxu0 %v1093_v48  ;;  %1735 = vmatprep.subr.bf16.mxu1 %v1093_v48  ;;  %v592_v22 = vadd.f32 %v528_v31, %v318_v11  ;;  %v593_v7 = vadd.f32 %v529_v58, %v319_v44 }
 0x147   :  { %1301 = vmatpush1.bf16.msra.mxu0 %v1092_v27  ;;  %1751 = vmatpush1.bf16.msra.mxu1 %v1092_v27  ;;  %v320_v62 = vmul.f32 %v2228_v9, %v219_v61  ;;  %v321_v6 = vmul.f32 %v2231_v13, %v219_v61  ;;  %v788_v21 = vpop.permute.xlu0 %787 }
 0x148   :  { %1567 = vperm.xlu1 %1792, %v1501_v36  }
 0x14b   :  { %v436_v29 = vpop.permute.xlu1 %435 }
 0x14c   :  { %1572 = vperm.xlu1 %1792, %v1502_v49   ;;  %v530_v8 = vmul.f32 %v2220_v63, %v436_v29  ;;  %v531_v16 = vmul.f32 %v2222_v2, %v436_v29 }
 0x14e   :  { %v594_v39 = vadd.f32 %v530_v8, %v320_v62  ;;  %v595_v24 = vadd.f32 %v531_v16, %v321_v6 }
 0x150   :  { %1582 = vperm.xlu1 %1792, %v1504_v0   ;;  %v753_v23 = vpop.permute.xlu1 %752  ;;  %v850_v26 = vadd.f32 %v768_v55, %v594_v39  ;;  %v851_v46 = vadd.f32 %v768_v55, %v595_v24  ;;  %v2873_v0 = vld [vmem:[#allocation12_spill] sm:$0xff] }
 0x151   :  { %v844_v57 = vadd.f32 %v753_v23, %v588_v52  ;;  %v845_v10 = vadd.f32 %v753_v23, %v589_v1  ;;  %v532_v52 = vmul.f32 %v2220_v63, %v2873_v0  ;;  %v533_v1 = vmul.f32 %v2222_v2, %v2873_v0 }
 0x152   :  { %v979_v51 = vmul.f32 0.2, %v851_v46  ;;  %v978_v48 = vmul.f32 0.2, %v850_v26  ;;  %vm915_vm2 = vcmp.gt.f32.partialorder %v851_v46, 0.0  ;;  %vm914_vm3 = vcmp.gt.f32.partialorder %v850_v26, 0.0 }
 0x153   :  { %vm908_vm0 = vcmp.gt.f32.partialorder %v844_v57, 0.0  ;;  %vm909_vm1 = vcmp.gt.f32.partialorder %v845_v10, 0.0  ;;  %v972_v17 = vmul.f32 0.2, %v844_v57  ;;  %v973_v60 = vmul.f32 0.2, %v845_v10 }
 0x154   :  { %v224_v4 = vpop.permute.xlu1 %223  ;;  %v1043_v36 = vsel %vm915_vm2, %v851_v46, %v979_v51  ;;  %v1042_v50 = vsel %vm914_vm3, %v850_v26, %v978_v48 }
 0x155   :  { %v1037_v15 = vsel %vm909_vm1, %v845_v10, %v973_v60  ;;  %v1036_v33 = vsel %vm908_vm0, %v844_v57, %v972_v17  ;;  %v322_v54 = vmul.f32 %v2228_v9, %v224_v4  ;;  %v323_v19 = vmul.f32 %v2231_v13, %v224_v4 }
 0x156   :  { %v1095_v14 = vpack.c.bf16 %v1039_v47, %v1037_v15  ;;  %v1094_v53 = vpack.c.bf16 %v1038_v30, %v1036_v33 }
 0x157   :  { %v596_v10 = vadd.f32 %v532_v52, %v322_v54  ;;  %v597_v59 = vadd.f32 %v533_v1, %v323_v19 }
 0x158   :  { %v229_v35 = vpop.permute.xlu1 %228  ;;  %1302 = vmatprep.subr.bf16.mxu0 %v1095_v14  ;;  %1736 = vmatprep.subr.bf16.mxu1 %v1095_v14 }
 0x159   :  { %1303 = vmatpush1.bf16.msra.mxu0 %v1094_v53  ;;  %1752 = vmatpush1.bf16.msra.mxu1 %v1094_v53  ;;  %v324_v38 = vmul.f32 %v2228_v9, %v229_v35  ;;  %v325_v29 = vmul.f32 %v2231_v13, %v229_v35 }
 0x15d   :  { %v444_v28 = vpop.permute.xlu1 %443 }
 0x15e   :  { %v534_v18 = vmul.f32 %v2220_v63, %v444_v28  ;;  %v535_v49 = vmul.f32 %v2222_v2, %v444_v28 }
 0x160   :  { %v598_v56 = vadd.f32 %v534_v18, %v324_v38  ;;  %v599_v5 = vadd.f32 %v535_v49, %v325_v29 }
 0x162   :  { %v763_v12 = vpop.permute.xlu1 %762  ;;  %v854_v23 = vadd.f32 %v778_v40, %v598_v56  ;;  %v855_v57 = vadd.f32 %v778_v40, %v599_v5 }
 0x163   :  { %v848_v3 = vadd.f32 %v763_v12, %v592_v22  ;;  %v849_v37 = vadd.f32 %v763_v12, %v593_v7  ;;  %v2874_v7 = vld [vmem:[#allocation13_spill] sm:$0xff] }
 0x164   :  { %v983_v15 = vmul.f32 0.2, %v855_v57  ;;  %v982_v47 = vmul.f32 0.2, %v854_v23  ;;  %vm919_vm6 = vcmp.gt.f32.partialorder %v855_v57, 0.0  ;;  %vm918_vm7 = vcmp.gt.f32.partialorder %v854_v23, 0.0 }
 0x165   :  { %vm912_vm4 = vcmp.gt.f32.partialorder %v848_v3, 0.0  ;;  %vm913_vm5 = vcmp.gt.f32.partialorder %v849_v37, 0.0  ;;  %v976_v41 = vmul.f32 0.2, %v848_v3  ;;  %v977_v27 = vmul.f32 0.2, %v849_v37 }
 0x166   :  { %v1047_v53 = vsel %vm919_vm6, %v855_v57, %v983_v15  ;;  %v1046_v16 = vsel %vm918_vm7, %v854_v23, %v982_v47  ;;  %v536_v12 = vmul.f32 %v2220_v63, %v2874_v7 }
 0x167   :  { %v234_v43 = vpop.permute.xlu1 %233  ;;  %v1041_v25 = vsel %vm913_vm5, %v849_v37, %v977_v27  ;;  %v1040_v61 = vsel %vm912_vm4, %v848_v3, %v976_v41  ;;  %v537_v3 = vmul.f32 %v2222_v2, %v2874_v7  ;;  %v2875_v27 = vld [vmem:[#allocation14_spill] sm:$0xff] }
 0x168   :  { %v1097_v45 = vpack.c.bf16 %v1043_v36, %v1041_v25  ;;  %v1096_v42 = vpack.c.bf16 %v1042_v50, %v1040_v61  ;;  %v326_v31 = vmul.f32 %v2228_v9, %v234_v43  ;;  %v327_v58 = vmul.f32 %v2231_v13, %v234_v43 }
 0x169   :  { %v540_v25 = vmul.f32 %v2220_v63, %v2875_v27  ;;  %v541_v43 = vmul.f32 %v2222_v2, %v2875_v27 }
 0x16a   :  { %1304 = vmatprep.subr.bf16.mxu0 %v1097_v45  ;;  %1737 = vmatprep.subr.bf16.mxu1 %v1097_v45  ;;  %v600_v48 = vadd.f32 %v536_v12, %v326_v31  ;;  %v601_v41 = vadd.f32 %v537_v3, %v327_v58  ;;  %v1815_v31 = vld [vmem:[%s2843_s2 + $0x30] ss:$8 sps:$4 sm:$0xff]  }
 0x16b   :  { %v239_v20 = vpop.permute.xlu1 %238  ;;  %1305 = vmatpush1.bf16.msra.mxu0 %v1096_v42  ;;  %1753 = vmatpush1.bf16.msra.mxu1 %v1096_v42  ;;  %v1816_v58 = vld [vmem:[%s2843_s2 + $0x70] ss:$8 sps:$4 sm:$0xff]  }
 0x16c   :  { %v328_v24 = vmul.f32 %v2228_v9, %v239_v20  ;;  %v329_v11 = vmul.f32 %v2231_v13, %v239_v20 }
 0x170   :  { %v452_v32 = vpop.permute.xlu1 %451 }
 0x171   :  { %v538_v35 = vmul.f32 %v2220_v63, %v452_v32  ;;  %v539_v62 = vmul.f32 %v2222_v2, %v452_v32 }
 0x173   :  { %v602_v28 = vadd.f32 %v538_v35, %v328_v24  ;;  %v603_v55 = vadd.f32 %v539_v62, %v329_v11  ;;  %v1799_v35 = vld [vmem:[%s2843_s2 + $0x14] ss:$8 sps:$4 sm:$0xff]   ;;  %v1805_v24 = vld [vmem:[%s2843_s2 + $0x24] ss:$8 sps:$4 sm:$0xff]  }
 0x174   :  { %v1801_v62 = vld [vmem:[%s2843_s2 + $0x54] ss:$8 sps:$4 sm:$0xff]   ;;  %v1807_v11 = vld [vmem:[%s2843_s2 + $0x64] ss:$8 sps:$4 sm:$0xff]  }
 0x175   :  { %v773_v34 = vpop.permute.xlu1 %772  ;;  %v858_v46 = vadd.f32 %v788_v21, %v602_v28  ;;  %v859_v22 = vadd.f32 %v788_v21, %v603_v55  ;;  %v1810_v28 = vld [vmem:[%s2843_s2 + $0x60] ss:$8 sps:$4 sm:$0xff]   ;;  %v1811_v55 = vld [vmem:[%s2843_s2 + $0x34] ss:$8 sps:$4 sm:$0xff]  }
 0x176   :  { %v852_v17 = vadd.f32 %v773_v34, %v596_v10  ;;  %v853_v60 = vadd.f32 %v773_v34, %v597_v59  ;;  %v1813_v21 = vld [vmem:[%s2843_s2 + $0x74] ss:$8 sps:$4 sm:$0xff]  }
 0x177   :  { %v987_v61 = vmul.f32 0.2, %v859_v22  ;;  %v986_v50 = vmul.f32 0.2, %v858_v46  ;;  %vm923_vm10 = vcmp.gt.f32.partialorder %v859_v22, 0.0  ;;  %vm922_vm11 = vcmp.gt.f32.partialorder %v858_v46, 0.0 }
 0x178   :  { %vm916_vm8 = vcmp.gt.f32.partialorder %v852_v17, 0.0  ;;  %vm917_vm9 = vcmp.gt.f32.partialorder %v853_v60, 0.0  ;;  %v980_v4 = vmul.f32 0.2, %v852_v17  ;;  %v981_v33 = vmul.f32 0.2, %v853_v60 }
 0x179   :  { %v244_v30 = vpop.permute.xlu1 %243  ;;  %v1051_v32 = vsel %vm923_vm10, %v859_v22, %v987_v61  ;;  %v1050_v40 = vsel %vm922_vm11, %v858_v46, %v986_v50 }
 0x17a   :  { %v1045_v14 = vsel %vm917_vm9, %v853_v60, %v981_v33  ;;  %v1044_v8 = vsel %vm916_vm8, %v852_v17, %v980_v4  ;;  %v330_v37 = vmul.f32 %v2228_v9, %v244_v30  ;;  %v331_v51 = vmul.f32 %v2231_v13, %v244_v30 }
 0x17b   :  { %v1099_v6 = vpack.c.bf16 %v1047_v53, %v1045_v14  ;;  %v1098_v39 = vpack.c.bf16 %v1046_v16, %v1044_v8  ;;  %v1793_v8 = vld [vmem:[%s2843_s2] ss:$8 sps:$4 sm:$0xff]  }
 0x17c   :  { %v604_v20 = vadd.f32 %v540_v25, %v330_v37  ;;  %v605_v38 = vadd.f32 %v541_v43, %v331_v51  ;;  %v1796_v16 = vld [vmem:[%s2843_s2 + $0x40] ss:$8 sps:$4 sm:$0xff]  }
 0x17d   :  { %v249_v44 = vpop.permute.xlu1 %248  ;;  %1306 = vmatprep.subr.bf16.mxu0 %v1099_v6  ;;  %1738 = vmatprep.subr.bf16.mxu1 %v1099_v6  ;;  %v1803_v6 = vld [vmem:[%s2843_s2 + $0x10] ss:$8 sps:$4 sm:$0xff]  }
 0x17e   :  { %1307 = vmatpush1.bf16.msra.mxu0 %v1098_v39  ;;  %1754 = vmatpush1.bf16.msra.mxu1 %v1098_v39  ;;  %v332_v5 = vmul.f32 %v2228_v9, %v249_v44  ;;  %v333_v54 = vmul.f32 %v2231_v13, %v249_v44  ;;  %v1804_v39 = vld [vmem:[%s2843_s2 + $0x50] ss:$8 sps:$4 sm:$0xff]   ;;  %v1809_v44 = vld [vmem:[%s2843_s2 + $0x20] ss:$8 sps:$4 sm:$0xff]  }
 0x182   :  { %v460_v26 = vpop.permute.xlu1 %459 }
 0x183   :  { %v542_v18 = vmul.f32 %v2220_v63, %v460_v26  ;;  %v543_v49 = vmul.f32 %v2222_v2, %v460_v26  ;;  %v1123_v26 = vpop.permute.xlu0 %1122 }
 0x185   :  { %v606_v2 = vadd.f32 %v542_v18, %v332_v5  ;;  %v607_v10 = vadd.f32 %v543_v49, %v333_v54 }
 0x187   :  { %v783_v36 = vpop.permute.xlu1 %782  ;;  %v1133_v22 = vpop.permute.xlu0 %1132 }
 0x188   :  { %v856_v45 = vadd.f32 %v783_v36, %v600_v48  ;;  %v857_v42 = vadd.f32 %v783_v36, %v601_v41 }
 0x18a   :  { %vm920_vm12 = vcmp.gt.f32.partialorder %v856_v45, 0.0  ;;  %vm921_vm13 = vcmp.gt.f32.partialorder %v857_v42, 0.0  ;;  %v984_v29 = vmul.f32 0.2, %v856_v45  ;;  %v985_v56 = vmul.f32 0.2, %v857_v42 }
 0x18b   :  { %v793_v19 = vpop.permute.xlu1 %792  ;;  %v1508_v12 = vpop.permute.xlu0 %1507 }
 0x18c   :  { %v860_v0 = vadd.f32 %v793_v19, %v604_v20  ;;  %v861_v52 = vadd.f32 %v793_v19, %v605_v38  ;;  %v1049_v1 = vsel %vm921_vm13, %v857_v42, %v985_v56  ;;  %v1048_v23 = vsel %vm920_vm12, %v856_v45, %v984_v29 }
 0x18d   :  { %v1101_v63 = vpack.c.bf16 %v1051_v32, %v1049_v1  ;;  %v1100_v57 = vpack.c.bf16 %v1050_v40, %v1048_v23 }
 0x18e   :  { %v988_v34 = vmul.f32 0.2, %v860_v0  ;;  %v989_v17 = vmul.f32 0.2, %v861_v52  ;;  %vm924_vm14 = vcmp.gt.f32.partialorder %v860_v0, 0.0  ;;  %vm925_vm15 = vcmp.gt.f32.partialorder %v861_v52, 0.0 }
 0x18f   :  { %v798_v59 = vpop.permute.xlu1 %797  ;;  %1308 = vmatprep.subr.bf16.mxu0 %v1101_v63  ;;  %1739 = vmatprep.subr.bf16.mxu1 %v1101_v63  ;;  %v2710_v37 = vpop.permute.xlu0 %1142 }
 0x190   :  { %v862_v60 = vadd.f32 %v798_v59, %v606_v2  ;;  %v863_v9 = vadd.f32 %v798_v59, %v607_v10  ;;  %1309 = vmatpush1.bf16.msra.mxu0 %v1100_v57  ;;  %1755 = vmatpush1.bf16.msra.mxu1 %v1100_v57  ;;  %v1053_v47 = vsel %vm925_vm15, %v861_v52, %v989_v17 }
 0x191   :  { %v1052_v33 = vsel %vm924_vm14, %v860_v0, %v988_v34 }
 0x192   :  { %vm926_vm0 = vcmp.gt.f32.partialorder %v862_v60, 0.0  ;;  %vm927_vm1 = vcmp.gt.f32.partialorder %v863_v9, 0.0  ;;  %v990_v13 = vmul.f32 0.2, %v862_v60  ;;  %v991_v15 = vmul.f32 0.2, %v863_v9 }
 0x193   :  { %v1128_v46 = vpop.permute.xlu1 %1127  ;;  %v2714_v48 = vpop.permute.xlu0 %1147 }
 0x194   :  { %v1055_v4 = vsel %vm927_vm1, %v863_v9, %v991_v15  ;;  %v1054_v30 = vsel %vm926_vm0, %v862_v60, %v990_v13 }
 0x195   :  { %v1103_v14 = vpack.c.bf16 %v1055_v4, %v1053_v47  ;;  %v1102_v53 = vpack.c.bf16 %v1054_v30, %v1052_v33 }
 0x197   :  { %1310 = vmatprep.subr.bf16.mxu0 %v1103_v14  ;;  %1740 = vmatprep.subr.bf16.mxu1 %v1103_v14  ;;  %v2708_v7 = vpop.permute.xlu1 %1137  ;;  %v2718_v27 = vpop.permute.xlu0 %1152 }
 0x198   :  { %1311 = vmatpush1.bf16.msra.mxu0 %v1102_v53  ;;  %1756 = vmatpush1.bf16.msra.mxu1 %v1102_v53 }
 0x19b   :  { %1313 = vmatmul.mubr.bf16.vlgmr.msra.gmra.mrb[0].mxu0 %v1793_v8  ;;  %1353 = vmatmul.mubr.bf16.vlgmr.msra.gmra.mrb[0].mxu1 %v1796_v16  ;;  %v1513_v3 = vpop.permute.xlu1 %1512  ;;  %v2722_v43 = vpop.permute.xlu0 %1157 }
 0x19c   :  { %1322 = vmatprep.mubr.bf16.mxu0 %v1799_v35  ;;  %1362 = vmatprep.mubr.bf16.mxu1 %v1801_v62 }
 0x19f   :  { %v2712_v51 = vpop.permute.xlu1 %1517  ;;  %v2726_v61 = vpop.permute.xlu0 %1162 }
 0x1a3   :  { %1323 = vmatmul.mubr.bf16.gmra.mrb[4].mxu0 %v1803_v6  ;;  %1363 = vmatmul.mubr.bf16.gmra.mrb[4].mxu1 %v1804_v39  ;;  %v2716_v41 = vpop.permute.xlu1 %1522  ;;  %v2738_v52 = vpop.permute.xlu0 %1167 }
 0x1a4   :  { %1332 = vmatprep.mubr.bf16.mxu0 %v1805_v24  ;;  %1372 = vmatprep.mubr.bf16.mxu1 %v1807_v11 }
 0x1a7   :  { %v2720_v25 = vpop.permute.xlu1 %1527  ;;  %v2751_v24 = vpop.permute.xlu0 %1172 }
 0x1ab   :  { %1333 = vmatmul.mubr.bf16.gmra.mrb[8].mxu0 %v1809_v44  ;;  %1373 = vmatmul.mubr.bf16.gmra.mrb[8].mxu1 %v1810_v28  ;;  %v2724_v36 = vpop.permute.xlu1 %1532 }
 0x1ac   :  { %1342 = vmatprep.mubr.bf16.mxu0 %v1811_v55  ;;  %1382 = vmatprep.mubr.bf16.mxu1 %v1813_v21 }
 0x1af   :  { %v2728_v50 = vpop.permute.xlu1 %1537 }
 0x1b3   :  { %1343 = vmatmul.mubr.bf16.gmra.mrb[12].mxu0 %v1815_v31  ;;  %1383 = vmatmul.mubr.bf16.gmra.mrb[12].mxu1 %v1816_v58  ;;  %v2740_v1 = vpop.permute.xlu1 %1542 }
 0x1b7   :  { %v2754_v28 = vpop.permute.xlu1 %1547 }
 0x26e   :  { %v1314_v45 = vpop.f32.mrb[0].mxu0  ;;  %v2730_v42 = vpop.f32.mrb[0].mxu1 }
 0x26f   :  { %v1315_v18 = vadd.f32 %v1314_v45, %v1123_v26  ;;  %v1316_v49 = vpop.f32.mrb[1].mxu0  ;;  %v2732_v20 = vpop.f32.mrb[1].mxu1 }
 0x270   :  { %v1317_v38 = vadd.f32 %v1316_v49, %v1123_v26  ;;  %v1318_v29 = vpop.f32.mrb[2].mxu0  ;;  %v2734_v56 = vpop.f32.mrb[2].mxu1 }
 0x271   :  { %vm1393_vm2 = vcmp.gt.f32.partialorder %v1315_v18, 0.0  ;;  %v1425_v5 = vmul.f32 0.2, %v1315_v18  ;;  %v1319_v54 = vadd.f32 %v1318_v29, %v1128_v46  ;;  %v1320_v19 = vpop.f32.mrb[3].mxu0  ;;  %v2736_v32 = vpop.f32.mrb[3].mxu1 }
 0x272   :  { %v1426_v0 = vmul.f32 0.2, %v1317_v38  ;;  %vm1394_vm3 = vcmp.gt.f32.partialorder %v1317_v38, 0.0  ;;  %v1321_v63 = vadd.f32 %v1320_v19, %v1128_v46 }
 0x273   :  { %v1457_v40 = vsel %vm1393_vm2, %v1315_v18, %v1425_v5  ;;  %vm1395_vm4 = vcmp.gt.f32.partialorder %v1319_v54, 0.0  ;;  %v1427_v23 = vmul.f32 0.2, %v1319_v54  ;;  %v1355_v5 = vadd.f32 %v2730_v42, %v2726_v61 }
 0x274   :  { %v1585_v10 = vmul.f32 %v1508_v12, %v1457_v40  ;;  %v1458_v9 = vsel %vm1394_vm3, %v1317_v38, %v1426_v0  ;;  %vm1396_vm5 = vcmp.gt.f32.partialorder %v1321_v63, 0.0  ;;  %v1428_v15 = vmul.f32 0.2, %v1321_v63 }
 0x275   :  { %v1459_v59 = vsel %vm1395_vm4, %v1319_v54, %v1427_v23  ;;  %v1586_v16 = vmul.f32 %v1508_v12, %v1458_v9  ;;  %v2770_v23 = vpop.permute.xlu0 %1177  ;;  %vm1409_vm11 = vcmp.gt.f32.partialorder %v1355_v5, 0.0  ;;  %v1441_v9 = vmul.f32 0.2, %v1355_v5 }
 0x276   :  { %v1324_v57 = vpop.f32.mrb[4].mxu0  ;;  %v2742_v2 = vpop.f32.mrb[4].mxu1  ;;  %v1587_v13 = vmul.f32 %v1513_v3, %v1459_v59  ;;  %v1460_v53 = vsel %vm1396_vm5, %v1321_v63, %v1428_v15  ;;  %v1359_v63 = vadd.f32 %v2734_v56, %v2738_v52 }
 0x277   :  { %v1325_v34 = vadd.f32 %v1324_v57, %v1133_v22  ;;  %v1326_v17 = vpop.f32.mrb[5].mxu0  ;;  %v2744_v60 = vpop.f32.mrb[5].mxu1  ;;  %v1588_v35 = vmul.f32 %v1513_v3, %v1460_v53 }
 0x278   :  { %v1328_v47 = vpop.f32.mrb[6].mxu0  ;;  %v2746_v4 = vpop.f32.mrb[6].mxu1  ;;  %v1617_v14 = vadd.f32 %v1587_v13, %v1585_v10  ;;  %v1327_v62 = vadd.f32 %v1326_v17, %v1133_v22  ;;  %vm1411_vm14 = vcmp.gt.f32.partialorder %v1359_v63, 0.0 }
 0x279   :  { %vm1397_vm6 = vcmp.gt.f32.partialorder %v1325_v34, 0.0  ;;  %v1330_v33 = vpop.f32.mrb[7].mxu0  ;;  %v2748_v30 = vpop.f32.mrb[7].mxu1  ;;  %v1429_v8 = vmul.f32 0.2, %v1325_v34  ;;  %v1329_v39 = vadd.f32 %v1328_v47, %v2708_v7  ;;  %v1638_v11 = vadd.f32 %v1588_v35, %v1586_v16 }
 0x27a   :  { %vm1398_vm7 = vcmp.gt.f32.partialorder %v1327_v62, 0.0  ;;  %v1430_v55 = vmul.f32 0.2, %v1327_v62  ;;  %v1331_v12 = vadd.f32 %v1330_v33, %v2708_v7  ;;  %v2777_v59 = vpop.permute.xlu1 %1552  ;;  %v1443_v33 = vmul.f32 0.2, %v1359_v63 }
 0x27b   :  { %v1461_v6 = vsel %vm1397_vm6, %v1325_v34, %v1429_v8  ;;  %vm1399_vm8 = vcmp.gt.f32.partialorder %v1329_v39, 0.0  ;;  %v1431_v58 = vmul.f32 0.2, %v1329_v39 }
 0x27c   :  { %v1589_v44 = vmul.f32 %v2712_v51, %v1461_v6  ;;  %v1462_v22 = vsel %vm1398_vm7, %v1327_v62, %v1430_v55  ;;  %vm1400_vm9 = vcmp.gt.f32.partialorder %v1331_v12, 0.0  ;;  %v1432_v19 = vmul.f32 0.2, %v1331_v12  ;;  %v2789_v6 = vpop.permute.xlu0 %1182 }
 0x27d   :  { %v1590_v18 = vmul.f32 %v2712_v51, %v1462_v22  ;;  %v1463_v49 = vsel %vm1399_vm8, %v1329_v39, %v1431_v58  ;;  %v1357_v51 = vadd.f32 %v2732_v20, %v2726_v61  ;;  %v1361_v39 = vadd.f32 %v2736_v32, %v2738_v52 }
 0x27e   :  { %v1334_v21 = vpop.f32.mrb[8].mxu0  ;;  %v1618_v31 = vadd.f32 %v1617_v14, %v1589_v44  ;;  %v2756_v26 = vpop.f32.mrb[8].mxu1  ;;  %v1591_v54 = vmul.f32 %v2716_v41, %v1463_v49  ;;  %v1464_v10 = vsel %vm1400_vm9, %v1331_v12, %v1432_v19  ;;  %v1475_v22 = vsel %vm1411_vm14, %v1359_v63, %v1443_v33 }
 0x27f   :  { %v1336_v46 = vpop.f32.mrb[9].mxu0  ;;  %v2759_v3 = vpop.f32.mrb[9].mxu1  ;;  %v1639_v0 = vadd.f32 %v1638_v11, %v1590_v18  ;;  %v1335_v7 = vadd.f32 %v1334_v21, %v2710_v37  ;;  %v1592_v42 = vmul.f32 %v2716_v41, %v1464_v10  ;;  %v1442_v56 = vmul.f32 0.2, %v1357_v51 }
 0x280   :  { %v1338_v45 = vpop.f32.mrb[10].mxu0  ;;  %v2762_v38 = vpop.f32.mrb[10].mxu1  ;;  %v1619_v57 = vadd.f32 %v1618_v31, %v1591_v54  ;;  %v1337_v15 = vadd.f32 %v1336_v46, %v2710_v37  ;;  %vm1410_vm12 = vcmp.gt.f32.partialorder %v1357_v51, 0.0  ;;  %v1365_v12 = vadd.f32 %v2742_v2, %v2751_v24 }
 0x281   :  { %v1340_v29 = vpop.f32.mrb[11].mxu0  ;;  %v2767_v40 = vpop.f32.mrb[11].mxu1  ;;  %vm1401_vm10 = vcmp.gt.f32.partialorder %v1335_v7, 0.0  ;;  %v1433_v34 = vmul.f32 0.2, %v1335_v7  ;;  %v1640_v13 = vadd.f32 %v1639_v0, %v1592_v42  ;;  %v1339_v47 = vadd.f32 %v1338_v45, %v2714_v48 }
 0x282   :  { %v1341_v41 = vadd.f32 %v1340_v29, %v2714_v48  ;;  %vm1402_vm13 = vcmp.gt.f32.partialorder %v1337_v15, 0.0  ;;  %v1434_v35 = vmul.f32 0.2, %v1337_v15  ;;  %v1473_v48 = vsel %vm1409_vm11, %v1355_v5, %v1441_v9  ;;  %v1558_v29 = vpop.permute.xlu1 %1557  ;;  %v1188_v0 = vpop.permute.xlu0 %1187 }
 0x283   :  { %v1465_v14 = vsel %vm1401_vm10, %v1335_v7, %v1433_v34  ;;  %vm1403_vm15 = vcmp.gt.f32.partialorder %v1339_v47, 0.0  ;;  %v1435_v11 = vmul.f32 0.2, %v1339_v47  ;;  %v1474_v31 = vsel %vm1410_vm12, %v1357_v51, %v1442_v56 }
 0x284   :  { %v1593_v16 = vmul.f32 %v2720_v25, %v1465_v14  ;;  %v1466_v55 = vsel %vm1402_vm13, %v1337_v15, %v1434_v35  ;;  %vm1404_vm0 = vcmp.gt.f32.partialorder %v1341_v41, 0.0  ;;  %v1436_v32 = vmul.f32 0.2, %v1341_v41 }
 0x285   :  { %v1594_v58 = vmul.f32 %v2720_v25, %v1466_v55  ;;  %v1467_v46 = vsel %vm1403_vm15, %v1339_v47, %v1435_v11  ;;  %vm1412_vm1 = vcmp.gt.f32.partialorder %v1361_v39, 0.0  ;;  %v1444_v52 = vmul.f32 0.2, %v1361_v39 }
 0x286   :  { %v1344_v17 = vpop.f32.mrb[12].mxu0  ;;  %v2781_v61 = vpop.f32.mrb[12].mxu1  ;;  %v1620_v44 = vadd.f32 %v1619_v57, %v1593_v16  ;;  %v1595_v45 = vmul.f32 %v2724_v36, %v1467_v46  ;;  %v1367_v5 = vadd.f32 %v2744_v60, %v2751_v24  ;;  %v1468_v25 = vsel %vm1404_vm0, %v1341_v41, %v1436_v32 }
 0x287   :  { %v1346_v20 = vpop.f32.mrb[13].mxu0  ;;  %v2784_v53 = vpop.f32.mrb[13].mxu1  ;;  %v1641_v18 = vadd.f32 %v1640_v13, %v1594_v58  ;;  %v1345_v49 = vadd.f32 %v1344_v17, %v2718_v27  ;;  %v1601_v7 = vmul.f32 %v2754_v28, %v1473_v48  ;;  %v2806_v2 = vmul.f32 %v2754_v28, %v1474_v31 }
 0x288   :  { %v1348_v8 = vpop.f32.mrb[14].mxu0  ;;  %v2787_v62 = vpop.f32.mrb[14].mxu1  ;;  %v1621_v54 = vadd.f32 %v1620_v44, %v1595_v45  ;;  %v1347_v19 = vadd.f32 %v1346_v20, %v2718_v27  ;;  %v1596_v51 = vmul.f32 %v2724_v36, %v1468_v25  ;;  %v1603_v63 = vmul.f32 %v2777_v59, %v1475_v22 }
 0x289   :  { %v1350_v37 = vpop.f32.mrb[15].mxu0  ;;  %v2794_v21 = vpop.f32.mrb[15].mxu1  ;;  %vm1405_vm2 = vcmp.gt.f32.partialorder %v1345_v49, 0.0  ;;  %vm1413_vm3 = vcmp.gt.f32.partialorder %v1365_v12, 0.0  ;;  %v1437_v57 = vmul.f32 0.2, %v1345_v49  ;;  %v1476_v60 = vsel %vm1412_vm1, %v1361_v39, %v1444_v52 }
 0x28a   :  { %vm1406_vm4 = vcmp.gt.f32.partialorder %v1347_v19, 0.0  ;;  %v1445_v24 = vmul.f32 0.2, %v1365_v12  ;;  %v1642_v10 = vadd.f32 %v1641_v18, %v1596_v51  ;;  %v1438_v42 = vmul.f32 0.2, %v1347_v19  ;;  %v1563_v15 = vpop.permute.xlu1 %1562  ;;  %v1193_v33 = vpop.permute.xlu0 %1192 }
 0x28b   :  { %v1446_v27 = vmul.f32 0.2, %v1367_v5  ;;  %v1369_v34 = vadd.f32 %v2746_v4, %v2770_v23  ;;  %v1469_v17 = vsel %vm1405_vm2, %v1345_v49, %v1437_v57  ;;  %v1349_v28 = vadd.f32 %v1348_v8, %v2722_v43 }
 0x28c   :  { %vm1414_vm5 = vcmp.gt.f32.partialorder %v1367_v5, 0.0  ;;  %v1375_v36 = vadd.f32 %v2756_v26, %v2789_v6  ;;  %v1597_v9 = vmul.f32 %v2728_v50, %v1469_v17  ;;  %v1470_v13 = vsel %vm1406_vm4, %v1347_v19, %v1438_v42 }
 0x28d   :  { %v1604_v47 = vmul.f32 %v2777_v59, %v1476_v60  ;;  %v1598_v20 = vmul.f32 %v2728_v50, %v1470_v13  ;;  %vm1407_vm6 = vcmp.gt.f32.partialorder %v1349_v28, 0.0  ;;  %v1439_v56 = vmul.f32 0.2, %v1349_v28 }
 0x28e   :  { %v1477_v4 = vsel %vm1413_vm3, %v1365_v12, %v1445_v24  ;;  %v1371_v14 = vadd.f32 %v2748_v30, %v2770_v23  ;;  %v1622_v41 = vadd.f32 %v1621_v54, %v1597_v9  ;;  %v1351_v8 = vadd.f32 %v1350_v37, %v2722_v43  ;;  %v1568_v37 = vpop.permute.xlu1 %1567  ;;  %v1198_v22 = vpop.permute.xlu0 %1197 }
 0x28f   :  { %v1478_v26 = vsel %vm1414_vm5, %v1367_v5, %v1446_v27  ;;  %v1447_v16 = vmul.f32 0.2, %v1369_v34  ;;  %v1643_v35 = vadd.f32 %v1642_v10, %v1598_v20  ;;  %v1471_v39 = vsel %vm1407_vm6, %v1349_v28, %v1439_v56 }
 0x290   :  { %vm1415_vm7 = vcmp.gt.f32.partialorder %v1369_v34, 0.0  ;;  %v1449_v11 = vmul.f32 0.2, %v1375_v36  ;;  %v1377_v50 = vadd.f32 %v2759_v3, %v2789_v6  ;;  %v1599_v59 = vmul.f32 %v2740_v1, %v1471_v39 }
 0x291   :  { %vm1417_vm8 = vcmp.gt.f32.partialorder %v1375_v36, 0.0  ;;  %v1379_v48 = vadd.f32 %v2762_v38, %v1188_v0  ;;  %vm1408_vm9 = vcmp.gt.f32.partialorder %v1351_v8, 0.0  ;;  %v1440_v44 = vmul.f32 0.2, %v1351_v8 }
 0x292   :  { %v1605_v30 = vmul.f32 %v1558_v29, %v1477_v4  ;;  %v1606_v23 = vmul.f32 %v1558_v29, %v1478_v26  ;;  %vm1416_vm10 = vcmp.gt.f32.partialorder %v1371_v14, 0.0  ;;  %v1623_v43 = vadd.f32 %v1622_v41, %v1599_v59  ;;  %v1573_v51 = vpop.permute.xlu1 %1572  ;;  %v1578_v17 = vpop.permute.xlu0 %1577 }
 0x293   :  { %v1479_v55 = vsel %vm1415_vm7, %v1369_v34, %v1447_v16  ;;  %v1448_v31 = vmul.f32 0.2, %v1371_v14  ;;  %v1385_v58 = vadd.f32 %v2781_v61, %v1193_v33  ;;  %v1472_v46 = vsel %vm1408_vm9, %v1351_v8, %v1440_v44 }
 0x294   :  { %v1481_v12 = vsel %vm1417_vm8, %v1375_v36, %v1449_v11  ;;  %v1450_v3 = vmul.f32 0.2, %v1377_v50  ;;  %v1624_v6 = vadd.f32 %v1623_v43, %v1601_v7  ;;  %v1600_v45 = vmul.f32 %v2740_v1, %v1472_v46 }
 0x295   :  { %vm1418_vm11 = vcmp.gt.f32.partialorder %v1377_v50, 0.0  ;;  %v1451_v38 = vmul.f32 0.2, %v1379_v48  ;;  %v1381_v32 = vadd.f32 %v2767_v40, %v1188_v0  ;;  %v1389_v52 = vadd.f32 %v2787_v62, %v1198_v22 }
 0x296   :  { %v1607_v18 = vmul.f32 %v1563_v15, %v1479_v55  ;;  %vm1419_vm12 = vcmp.gt.f32.partialorder %v1379_v48, 0.0  ;;  %v1625_v49 = vadd.f32 %v1624_v6, %v1603_v63  ;;  %v1644_v29 = vadd.f32 %v1643_v35, %v1600_v45  ;;  %v1583_v56 = vpop.permute.xlu1 %1582  ;;  %v1663_v43 = vpop.permute.xlu0 %1662 }
 0x297   :  { %v1480_v5 = vsel %vm1416_vm10, %v1371_v14, %v1448_v31  ;;  %v1609_v61 = vmul.f32 %v1568_v37, %v1481_v12  ;;  %v1453_v54 = vmul.f32 0.2, %v1385_v58  ;;  %v1387_v25 = vadd.f32 %v2784_v53, %v1193_v33  ;;  %v2876_v31 = vld [vmem:[#allocation15_spill] sm:$0xff] }
 0x298   :  { %v1482_v19 = vsel %vm1418_vm11, %v1377_v50, %v1450_v3  ;;  %vm1421_vm13 = vcmp.gt.f32.partialorder %v1385_v58, 0.0  ;;  %v1626_v7 = vadd.f32 %v1625_v49, %v1605_v30  ;;  %v1645_v1 = vadd.f32 %v1644_v29, %v2806_v2 }
 0x299   :  { %v1483_v57 = vsel %vm1419_vm12, %v1379_v48, %v1451_v38  ;;  %v1452_v40 = vmul.f32 0.2, %v1381_v32  ;;  %v1455_v0 = vmul.f32 0.2, %v1389_v52  ;;  %v1391_v62 = vadd.f32 %v2794_v21, %v1198_v22 }
 0x29a   :  { %vm1420_vm14 = vcmp.gt.f32.partialorder %v1381_v32, 0.0  ;;  %vm1423_vm15 = vcmp.gt.f32.partialorder %v1389_v52, 0.0  ;;  %v1627_v63 = vadd.f32 %v1626_v7, %v1607_v18  ;;  %v1646_v60 = vadd.f32 %v1645_v1, %v1604_v47  ;;  %v2877_v1 = vld [vmem:[#allocation9_spill] sm:$0xff] }
 0x29b   :  { %v1608_v24 = vmul.f32 %v1563_v15, %v1480_v5  ;;  %v1485_v10 = vsel %vm1421_vm13, %v1385_v58, %v1453_v54  ;;  %v1454_v42 = vmul.f32 0.2, %v1387_v25  ;;  %v1611_v27 = vmul.f32 %v1573_v51, %v1483_v57 }
 0x29c   :  { %vm1422_vm0 = vcmp.gt.f32.partialorder %v1387_v25, 0.0  ;;  %v1628_v53 = vadd.f32 %v1627_v63, %v1609_v61  ;;  %v1647_v34 = vadd.f32 %v1646_v60, %v1606_v23  ;;  %v1610_v28 = vmul.f32 %v1568_v37, %v1482_v19 }
 0x29d   :  { %v1484_v2 = vsel %vm1420_vm14, %v1381_v32, %v1452_v40  ;;  %v1487_v36 = vsel %vm1423_vm15, %v1389_v52, %v1455_v0  ;;  %v1456_v9 = vmul.f32 0.2, %v1391_v62  ;;  %v1613_v13 = vmul.f32 %v1578_v17, %v1485_v10 }
 0x29e   :  { %v1629_v20 = vadd.f32 %v1628_v53, %v1611_v27  ;;  %vm1424_vm1 = vcmp.gt.f32.partialorder %v1391_v62, 0.0  ;;  %v1648_v21 = vadd.f32 %v1647_v34, %v1608_v24  ;;  %v1486_v33 = vsel %vm1422_vm0, %v1387_v25, %v1454_v42 }
 0x29f   :  { %v1612_v4 = vmul.f32 %v1573_v51, %v1484_v2  ;;  %v1615_v47 = vmul.f32 %v1583_v56, %v1487_v36  ;;  %v1488_v41 = vsel %vm1424_vm1, %v1391_v62, %v1456_v9  ;;  %v1614_v8 = vmul.f32 %v1578_v17, %v1486_v33 }
 0x2a0   :  { %v1630_v15 = vadd.f32 %v1629_v20, %v1613_v13  ;;  %v1649_v14 = vadd.f32 %v1648_v21, %v1610_v28  ;;  %v1616_v39 = vmul.f32 %v1583_v56, %v1488_v41  ;;  %v1668_v58 = vrot.slane %v1663_v43, %v2876_v31 }
 0x2a1   :  { %v1827_v54 = vmov 1966171168   ;;  %v2878_v62 = vlaneseq }
 0x2a2   :  { %v1631_v26 = vadd.f32 %v1630_v15, %v1615_v47  ;;  %v1650_v16 = vadd.f32 %v1649_v14, %v1612_v4  ;;  %v1685_v25 = vunpack.c.l.s4 %v1827_v54 }
 0x2a3   :  { %vm1701_vm2 = vcmp.lt.s32.totalorder %v2878_v62, 256 }
 0x2a4   :  { %v1632_v35 = vrot.slane %v1631_v26, 4  ;;  %v1651_v11 = vadd.f32 %v1650_v16, %v1614_v8  ;;  %v1686_v19 = vunpack.c.0.s8 %v1685_v25 }
 0x2a6   :  { %v1633_v50 = vadd.f32 %v1632_v35, %v1631_v26  ;;  %v1652_v59 = vadd.f32 %v1651_v11, %v1616_v39  ;;  %v1689_v51 = vsub.s32 %v1686_v19, %v2877_v1 }
 0x2a8   :  { %v1634_v48 = vrot.slane %v1633_v50, 2  ;;  %v1653_v44 = vrot.slane %v1652_v59, 4 }
 0x2aa   :  { %v1635_v30 = vadd.f32 %v1634_v48, %v1633_v50  ;;  %v1654_v23 = vadd.f32 %v1653_v44, %v1652_v59 }
 0x2ac   :  { %v1636_v37 = vrot.slane %v1635_v30, 1  ;;  %v1655_v55 = vrot.slane %v1654_v23, 2 }
 0x2ae   :  { %v1637_v46 = vadd.f32 %v1636_v37, %v1635_v30  ;;  %v1656_v22 = vadd.f32 %v1655_v55, %v1654_v23 }
 0x2b0   :  { %v1669_v12 = vadd.f32 %v1668_v58, %v1637_v46  ;;  %v1657_v3 = vrot.slane %v1656_v22, 1 }
 0x2b2   :  { %v1671_v6 = vsub.f32 0.0, %v1669_v12  ;;  %v1658_v45 = vadd.f32 %v1657_v3, %v1656_v22 }
 0x2b4   :  { %v1673_v38 = vmul.f32 1.442695, %v1671_v6  ;;  %v1670_v32 = vadd.f32 %v1668_v58, %v1658_v45 }
 0x2b6   :  { %1817 = vpow2.f32 %v1673_v38  ;;  %v1672_v52 = vsub.f32 0.0, %v1670_v32 }
 0x2b8   :  { %v1675_v18 = vmul.f32 1.442695, %v1672_v52 }
 0x2ba   :  { %1819 = vpow2.f32 %v1675_v18 }
 0x2c0   :  { %v1818_v49 = vpop.eup %1817 }
 0x2c1   :  { %v1677_v29 = vadd.f32 1.0, %v1818_v49 }
 0x2c3   :  { %1821 = vrcp.f32 %v1677_v29 }
 0x2c4   :  { %v1820_v5 = vpop.eup %1819 }
 0x2c5   :  { %v1678_v61 = vadd.f32 1.0, %v1820_v5 }
 0x2c7   :  { %1823 = vrcp.f32 %v1678_v61 }
 0x2cd   :  { %v1822_v7 = vpop.eup %1821 }
 0x2d1   :  { %v1824_v57 = vpop.eup %1823 }
 0x2d2   :  { %v1683_v40 = vcombine.low %v1822_v7, %v1824_v57 }
 0x2d4   :  { %v1690_v0 = vrot.slane %v1683_v40, %v1689_v51 }
 0x2d6   :  { %v1697_v63 = vrot.slane %v1690_v0, %v1689_v51 }
 0x2d8   :  { %1703 = vst.msk [vmem:[%s2849_s8] sm:$0x3] %vm1701_vm2, %v1697_v63 }

</bundles_post_ra>
